<compile_context>
chip_gen: v7x
topology: tpu7x:2x2x1
jax: 0.10.0
libtpu: 0.0.40
codegen_flags: <defaults>
</compile_context>

<pallas_src>
import numpy as np
import jax
import jax.numpy as jnp
from jax.experimental import pallas as pl
from jax.experimental.pallas import tpu as pltpu

_SQRT_HALF = 0.7071067811865476
_SQRT_2_OVER_PI = 0.7978845608028654
_LANE = 128


def _gelu(x, approximate=False):
    if approximate:
        # tanh approximation -> EUP slot (VPU slot is the binding unit at
        # production sizes).  Exact erf (torch default) is the default path.
        return 0.5 * x * (1.0 + jnp.tanh(_SQRT_2_OVER_PI * (x + 0.044715 * x * x * x)))
    return 0.5 * x * (1.0 + jax.lax.erf(x * _SQRT_HALF))


# ---------------------------------------------------------------------------
# Static (shape-only) matrices: adaptive avg pooling, 3x3 valid-conv selection,
# align_corners bilinear upsample, and local-conv roll shifts / border masks.
# ---------------------------------------------------------------------------
def adaptive_avg_pool_matrix(out_size, in_size):
    m = np.zeros((out_size, in_size), np.float32)
    for i in range(out_size):
        s = (i * in_size) // out_size
        e = -((-(i + 1) * in_size) // out_size)  # ceil
        m[i, s:e] = 1.0 / (e - s)
    return m


def bilinear_align_corners_matrix(out_size, in_size):
    m = np.zeros((out_size, in_size), np.float32)
    if in_size == 1:
        m[:, 0] = 1.0
        return m
    scale = (in_size - 1) / (out_size - 1) if out_size > 1 else 0.0
    for o in range(out_size):
        src = o * scale
        i0 = min(int(np.floor(src)), in_size - 1)
        i1 = min(i0 + 1, in_size - 1)
        f = src - i0
        m[o, i0] += 1.0 - f
        m[o, i1] += f
    return m


def dw_valid_select_matrices(b):
    bo = b - 2
    sel = np.zeros((9, bo * bo, b * b), np.float32)
    for k in range(9):
        dy, dx = divmod(k, 3)
        for i in range(bo):
            for j in range(bo):
                sel[k, i * bo + j, (i + dy) * b + (j + dx)] = 1.0
    return sel


def _build_static(H, W, bins):
    HW = H * W
    # local 3x3 depthwise conv: roll amounts + zero-padding masks for 9 taps.
    # rolled[p] = x[(p + off) mod HW] with off = (dy-1)*W + (dx-1)  (jnp.roll
    # semantics: shift = (-off) mod HW), masked where the tap leaves the image.
    shifts = []
    lmask = np.zeros((9, HW), np.float32)
    for k in range(9):
        dy, dx = divmod(k, 3)
        off = (dy - 1) * W + (dx - 1)
        shifts.append((-off) % HW)
        for i in range(H):
            ii = i + dy - 1
            if not (0 <= ii < H):
                continue
            for j in range(W):
                if 0 <= j + dx - 1 < W:
                    lmask[k, i * W + j] = 1.0

    poolT_parts, selBs, upTs, bin_offsets = [], [], [], []
    off = 0
    for b in bins:
        bo = b - 2
        pool = np.kron(adaptive_avg_pool_matrix(b, H),
                       adaptive_avg_pool_matrix(b, W))              # (b^2, HW)
        # pad each branch's pool columns to a 128-lane boundary so the pooled
        # slice for this branch starts lane-aligned (no per-branch lane shift).
        cols = -(-(b * b) // _LANE) * _LANE
        pt = np.zeros((HW, cols), np.float32)
        pt[:, :b * b] = pool.T
        poolT_parts.append(pt)
        sel = dw_valid_select_matrices(b)                            # (9, bo^2, b^2)
        # selB[p, k*bo^2 + o] = sel[k, o, p]  -> one stacked matmul per branch
        selB = np.transpose(sel, (2, 0, 1)).reshape(b * b, 9 * bo * bo)
        selBs.append(np.ascontiguousarray(selB, np.float32))
        up = np.kron(bilinear_align_corners_matrix(H, bo),
                     bilinear_align_corners_matrix(W, bo))           # (HW, bo^2)
        upTs.append(np.ascontiguousarray(up.T, np.float32))          # (bo^2, HW)
        bin_offsets.append(off)
        off += cols
    poolT_all = np.ascontiguousarray(np.concatenate(poolT_parts, axis=1),
                                     np.float32)                     # (HW, sum cols)
    return shifts, lmask, poolT_all, bin_offsets, selBs, upTs


# ---------------------------------------------------------------------------
# Fused kernel: local depthwise+GELU and every pyramid branch, for NB folded
# batch elements per grid step.
# ---------------------------------------------------------------------------
def _make_fused_kernel(bins, cin, cred, nb_fold, H, W, shifts, bin_offsets,
                       compute_dtype, approximate_gelu):
    HW = H * W
    nb = len(bins)
    rows_in = nb_fold * cin
    rows_red = nb_fold * cred

    def kernel(x_ref, wl_ref, lmask_ref, poolT_ref, w1_ref, b1_ref, wd_ref, *rest):
        # x_ref    : (1, NB*Cin, HW)       channels-first, HW on lanes
        # wl_ref   : (NB*Cin, 9)           local depthwise taps (f32), k = dy*3+dx
        # lmask_ref: (9, HW)               zero-padding border masks (f32)
        # poolT_ref: (HW, sum cols)        stacked, lane-padded pool matrices
        # w1_ref   : (nb, NB*Cred, NB*Cin) block-diag 1x1 conv weights
        # b1_ref   : (nb, NB*Cred, 1)      1x1 conv biases (f32)
        # wd_ref   : (nb, NB*Cred, 9)      branch depthwise taps (f32)
        # rest     : per branch (selB (bin^2, 9*bo^2), upT (bo^2, HW)), then o_ref
        # o_ref    : (1, NB*(Cin + nb*Cred), HW)
        o_ref = rest[-1]
        br_refs = rest[:-1]

        x = x_ref[0]                                   # (NB*Cin, HW)
        wl = wl_ref[...]                               # hoisted tap weights
        lmask = lmask_ref[...]

        # ---- local branch: depthwise 3x3 (pad=1, groups=Cin) + GELU ---------
        acc = jnp.zeros((rows_in, HW), jnp.float32)
        for k in range(9):
            rolled = x if shifts[k] == 0 else pltpu.roll(x, shifts[k], axis=1)
            acc = acc + (rolled * lmask[k:k + 1, :]) * wl[:, k:k + 1]
        local = _gelu(acc, approximate_gelu)           # (NB*Cin, HW) f32

        # ---- all pyramid pools in one matmul (f32 accumulation) -------------
        pooled_all = jnp.dot(x, poolT_ref[...],
                             preferred_element_type=jnp.float32)    # (NB*Cin, cols)

        br_outs = []
        for bi, b in enumerate(bins):
            bo = b - 2
            bin2, bo2 = b * b, bo * bo
            poff = bin_offsets[bi]
            selB_ref = br_refs[2 * bi]
            upT_ref = br_refs[2 * bi + 1]

            pooled = pooled_all[:, poff:poff + bin2].astype(compute_dtype)
            # 1x1 conv (block-diag over folded batch) + bias + GELU
            y = jnp.dot(w1_ref[bi], pooled,
                        preferred_element_type=jnp.float32) + b1_ref[bi]
            y = _gelu(y, approximate_gelu)                            # (NB*Cred, bin2)
            # depthwise 3x3 "valid": one stacked matmul + 9 VPU FMAs
            t = jnp.dot(y.astype(compute_dtype), selB_ref[...],
                        preferred_element_type=jnp.float32)           # (NB*Cred, 9*bo2)
            wd = wd_ref[bi]                                           # (NB*Cred, 9)
            z = jnp.zeros((rows_red, bo2), jnp.float32)
            for k in range(9):
                z = z + wd[:, k:k + 1] * t[:, k * bo2:(k + 1) * bo2]
            z = _gelu(z, approximate_gelu)                            # (NB*Cred, bo2)
            # bilinear align_corners upsample to (H, W)
            if bo == 1:
                # align_corners upsample from a 1x1 map is exactly the all-ones
                # matrix -> lane broadcast, skip the K=1 matmul.
                out = jnp.broadcast_to(z, (rows_red, HW))
            else:
                out = jnp.dot(z.astype(compute_dtype), upT_ref[...],
                              preferred_element_type=jnp.float32)     # (NB*Cred, HW)
            br_outs.append(out)

        # ---- single interleaved full-block store (lane + sublane dense) -----
        pieces = []
        for j in range(nb_fold):
            pieces.append(local[j * cin:(j + 1) * cin, :])
            for bi in range(nb):
                pieces.append(br_outs[bi][j * cred:(j + 1) * cred, :])
        full = jnp.concatenate(pieces, axis=0)         # (NB*Ctot, HW)
        o_ref[0, :, :] = full.astype(o_ref.dtype)

    return kernel


# ---------------------------------------------------------------------------
# Full ModifyPPM forward (single fused pallas_call) and a plain-JAX reference.
# ---------------------------------------------------------------------------
def modify_ppm_forward(x_nchw, params, bins, *, batch_block=None,
                       compute_dtype=jnp.float32, approximate_gelu=False):
    assert all(b >= 3 for b in bins), "ModifyPPM needs bin >= 3 (valid 3x3 dw conv)"
    N, cin, H, W = x_nchw.shape
    HW = H * W
    nb = len(bins)
    cred = params["branches"][0][0].shape[0]
    out_dtype = x_nchw.dtype

    # Batch folding: NB batch elements per block.  v7x: pass batch_block <= N//2
    # to keep >= 2 parallel grid steps (2 TensorCores); v5e/v6e: fold everything.
    if batch_block is None:
        batch_block = N
    batch_block = max(1, min(int(batch_block), N))
    while N % batch_block:
        batch_block -= 1
    NB = batch_block
    n_blocks = N // NB

    shifts, lmask, poolT_all, bin_offsets, selBs, upTs = _build_static(H, W, bins)

    # Contiguous HBM reshape (no transpose): (N, Cin, H, W) -> (N/NB, NB*Cin, HW)
    x_fold = x_nchw.reshape(n_blocks, NB * cin, HW).astype(compute_dtype)

    eye = np.eye(NB, dtype=np.float32)
    wl = jnp.tile(params["local_w"].reshape(cin, 9), (NB, 1))          # (NB*Cin, 9) f32
    w1_all = jnp.stack([jnp.kron(jnp.asarray(eye), br[0])
                        for br in params["branches"]]).astype(compute_dtype)
    b1_all = jnp.stack([jnp.tile(br[1], (NB,))
                        for br in params["branches"]])[..., None]      # (nb, NB*Cred, 1)
    wd_all = jnp.stack([jnp.tile(br[2].reshape(cred, 9), (NB, 1))
                        for br in params["branches"]])                 # (nb, NB*Cred, 9)

    ctot = cin + nb * cred
    sum_cols = int(poolT_all.shape[1])

    in_specs = [
        pl.BlockSpec((1, NB * cin, HW), lambda n: (n, 0, 0)),
        pl.BlockSpec((NB * cin, 9), lambda n: (0, 0)),
        pl.BlockSpec((9, HW), lambda n: (0, 0)),
        pl.BlockSpec((HW, sum_cols), lambda n: (0, 0)),
        pl.BlockSpec((nb, NB * cred, NB * cin), lambda n: (0, 0, 0)),
        pl.BlockSpec((nb, NB * cred, 1), lambda n: (0, 0, 0)),
        pl.BlockSpec((nb, NB * cred, 9), lambda n: (0, 0, 0)),
    ]
    args = [x_fold, wl, jnp.asarray(lmask),
            jnp.asarray(poolT_all).astype(compute_dtype),
            w1_all, b1_all, wd_all]
    for selB, upT in zip(selBs, upTs):
        in_specs.append(pl.BlockSpec(tuple(int(d) for d in selB.shape),
                                     lambda n: (0, 0)))
        in_specs.append(pl.BlockSpec(tuple(int(d) for d in upT.shape),
                                     lambda n: (0, 0)))
        args.append(jnp.asarray(selB).astype(compute_dtype))
        args.append(jnp.asarray(upT).astype(compute_dtype))

    kernel = _make_fused_kernel(tuple(bins), cin, cred, NB, H, W, shifts,
                                bin_offsets, compute_dtype, approximate_gelu)

    out_fold = pl.pallas_call(
        kernel,
        out_shape=jax.ShapeDtypeStruct((n_blocks, NB * ctot, HW), out_dtype),
        grid=(n_blocks,),
        in_specs=in_specs,
        out_specs=pl.BlockSpec((1, NB * ctot, HW), lambda n: (n, 0, 0)),
        compiler_params=pltpu.CompilerParams(dimension_semantics=("parallel",)),
    )(*args)
    # Per-batch channel layout inside each block is [local, branch0, branch1, ...],
    # so this reshape is a free view back to NCHW.
    return out_fold.reshape(N, ctot, H, W)


def modify_ppm_reference(x_nchw, params, bins):
    N, Cin, H, W = x_nchw.shape
    prec = jax.lax.Precision.HIGHEST
    wl = params["local_w"]
    xp = jnp.pad(x_nchw, ((0, 0), (0, 0), (1, 1), (1, 1)))
    loc = jnp.zeros((N, Cin, H, W), jnp.float32)
    for dy in range(3):
        for dx in range(3):
            loc = loc + xp[:, :, dy:dy + H, dx:dx + W] * wl[None, :, dy, dx, None, None]
    outs = [_gelu(loc)]

    xf = x_nchw.reshape(N, Cin, H * W)
    for bi, b in enumerate(bins):
        bo = b - 2
        pool_mat = jnp.asarray(np.kron(adaptive_avg_pool_matrix(b, H),
                                       adaptive_avg_pool_matrix(b, W)))
        up_mat = jnp.asarray(np.kron(bilinear_align_corners_matrix(H, bo),
                                     bilinear_align_corners_matrix(W, bo)))
        sel = jnp.asarray(dw_valid_select_matrices(b))
        w1, b1, wd = params["branches"][bi]
        cred = w1.shape[0]
        pooled = jnp.einsum('ph,nch->ncp', pool_mat, xf, precision=prec)
        y = _gelu(jnp.einsum('rc,ncp->nrp', w1, pooled, precision=prec) + b1[None, :, None])
        z = jnp.zeros((N, cred, bo * bo), jnp.float32)
        for k in range(9):
            dy, dx = divmod(k, 3)
            z = z + jnp.einsum('op,nrp->nro', sel[k], y, precision=prec) * wd[None, :, dy, dx, None]
        z = _gelu(z)
        out = jnp.einsum('ho,nro->nrh', up_mat, z, precision=prec)
        outs.append(out.reshape(N, cred, H, W))
    return jnp.concatenate(outs, axis=1)


if __name__ == "__main__":
    in_dim, reduction_dim, bins = 4, 4, (3, 6)
    N, H, W = 2, 16, 16

    key = jax.random.PRNGKey(0)
    keys = jax.random.split(key, 2 + 3 * len(bins))
    x = jax.random.normal(keys[0], (N, in_dim, H, W), jnp.float32)

    params = {
        "local_w": 0.2 * jax.random.normal(keys[1], (in_dim, 3, 3), jnp.float32),
        "branches": [],
    }
    for bi in range(len(bins)):
        kw, kb, kd = keys[2 + 3 * bi], keys[3 + 3 * bi], keys[4 + 3 * bi]
        params["branches"].append((
            0.2 * jax.random.normal(kw, (reduction_dim, in_dim), jnp.float32),
            0.1 * jax.random.normal(kb, (reduction_dim,), jnp.float32),
            0.2 * jax.random.normal(kd, (reduction_dim, 3, 3), jnp.float32),
        ))

    ref = jax.block_until_ready(modify_ppm_reference(x, params, bins))

    # Config 1 (exact torch parity): f32 operands, full batch folding
    # (single grid step; best on single-TC v5e/v6e).
    out = jax.block_until_ready(
        modify_ppm_forward(x, params, bins, batch_block=N))
    assert out.shape == (N, in_dim + len(bins) * reduction_dim, H, W), out.shape
    np.testing.assert_allclose(np.asarray(out), np.asarray(ref),
                               rtol=2e-3, atol=2e-3)

    # Config 2 (v6e/v7x flavor): bf16 MXU operands + tanh-approx GELU, and
    # batch_block = N//2 so >= 2 parallel grid steps feed both v7x TensorCores.
    out_bf16 = jax.block_until_ready(
        modify_ppm_forward(x, params, bins, batch_block=max(1, N // 2),
                           compute_dtype=jnp.bfloat16, approximate_gelu=True))
    np.testing.assert_allclose(np.asarray(out_bf16), np.asarray(ref),
                               rtol=2e-2, atol=2e-2)

    print("KERNEL_OK")
</pallas_src>

<mosaic_0001>
module attributes {stable_mosaic.version = 11 : i64} {
  func.func @kernel(%arg0: i32, %arg1: memref<1x8x256xf32, #tpu.memory_space<vmem>>, %arg2: memref<8x9xf32, #tpu.memory_space<vmem>>, %arg3: memref<9x256xf32, #tpu.memory_space<vmem>>, %arg4: memref<256x256xf32, #tpu.memory_space<vmem>>, %arg5: memref<2x8x8xf32, #tpu.memory_space<vmem>>, %arg6: memref<2x8x1xf32, #tpu.memory_space<vmem>>, %arg7: memref<2x8x9xf32, #tpu.memory_space<vmem>>, %arg8: memref<9x9xf32, #tpu.memory_space<vmem>>, %arg9: memref<1x256xf32, #tpu.memory_space<vmem>>, %arg10: memref<36x144xf32, #tpu.memory_space<vmem>>, %arg11: memref<16x256xf32, #tpu.memory_space<vmem>>, %arg12: memref<1x24x256xf32, #tpu.memory_space<vmem>>) attributes {dimension_semantics = [#tpu.dimension_semantics<parallel>], iteration_bounds = array<i64: 1>, scalar_prefetch = 0 : i64, scratch_operands = 0 : i64, tpu.core_type = #tpu.core_type<tc>, window_params = [{transform_indices = @transform_0, window_bounds = array<i64: 1, 8, 256>}, {pipeline_mode = #tpu.pipeline_mode<synchronous>, transform_indices = @transform_1, window_bounds = array<i64: 8, 9>}, {pipeline_mode = #tpu.pipeline_mode<synchronous>, transform_indices = @transform_2, window_bounds = array<i64: 9, 256>}, {pipeline_mode = #tpu.pipeline_mode<synchronous>, transform_indices = @transform_3, window_bounds = array<i64: 256, 256>}, {pipeline_mode = #tpu.pipeline_mode<synchronous>, transform_indices = @transform_4, window_bounds = array<i64: 2, 8, 8>}, {pipeline_mode = #tpu.pipeline_mode<synchronous>, transform_indices = @transform_5, window_bounds = array<i64: 2, 8, 1>}, {pipeline_mode = #tpu.pipeline_mode<synchronous>, transform_indices = @transform_6, window_bounds = array<i64: 2, 8, 9>}, {pipeline_mode = #tpu.pipeline_mode<synchronous>, transform_indices = @transform_7, window_bounds = array<i64: 9, 9>}, {pipeline_mode = #tpu.pipeline_mode<synchronous>, transform_indices = @transform_8, window_bounds = array<i64: 1, 256>}, {pipeline_mode = #tpu.pipeline_mode<synchronous>, transform_indices = @transform_9, window_bounds = array<i64: 36, 144>}, {pipeline_mode = #tpu.pipeline_mode<synchronous>, transform_indices = @transform_10, window_bounds = array<i64: 16, 256>}, {transform_indices = @transform_11, window_bounds = array<i64: 1, 24, 256>}]} {
    %c0 = arith.constant 0 : index
    %c0_0 = arith.constant 0 : index
    %c0_1 = arith.constant 0 : index
    %0 = vector.load %arg1[%c0, %c0_0, %c0_1] : memref<1x8x256xf32, #tpu.memory_space<vmem>>, vector<1x8x256xf32>
    %1 = vector.shape_cast %0 : vector<1x8x256xf32> to vector<8x256xf32>
    %c0_2 = arith.constant 0 : index
    %c0_3 = arith.constant 0 : index
    %2 = vector.load %arg2[%c0_2, %c0_3] : memref<8x9xf32, #tpu.memory_space<vmem>>, vector<8x9xf32>
    %c0_4 = arith.constant 0 : index
    %c0_5 = arith.constant 0 : index
    %3 = vector.load %arg3[%c0_4, %c0_5] : memref<9x256xf32, #tpu.memory_space<vmem>>, vector<9x256xf32>
    %cst = arith.constant 0.000000e+00 : f32
    %4 = vector.broadcast %cst : f32 to vector<8x256xf32>
    %c17_i32 = arith.constant 17 : i32
    %5 = tpu.dynamic_rotate %1 by %c17_i32 dim 1 : vector<8x256xf32>, i32 -> vector<8x256xf32>
    %6 = vector.extract_strided_slice %3 {offsets = [0, 0], sizes = [1, 256], strides = [1, 1]} : vector<9x256xf32> to vector<1x256xf32>
    %7 = vector.broadcast %6 : vector<1x256xf32> to vector<8x256xf32>
    %8 = arith.mulf %5, %7 : vector<8x256xf32>
    %9 = vector.extract_strided_slice %2 {offsets = [0, 0], sizes = [8, 1], strides = [1, 1]} : vector<8x9xf32> to vector<8x1xf32>
    %10 = vector.broadcast %9 : vector<8x1xf32> to vector<8x256xf32>
    %11 = arith.mulf %8, %10 : vector<8x256xf32>
    %12 = arith.addf %4, %11 : vector<8x256xf32>
    %c16_i32 = arith.constant 16 : i32
    %13 = tpu.dynamic_rotate %1 by %c16_i32 dim 1 : vector<8x256xf32>, i32 -> vector<8x256xf32>
    %14 = vector.extract_strided_slice %3 {offsets = [1, 0], sizes = [1, 256], strides = [1, 1]} : vector<9x256xf32> to vector<1x256xf32>
    %15 = vector.broadcast %14 : vector<1x256xf32> to vector<8x256xf32>
    %16 = arith.mulf %13, %15 : vector<8x256xf32>
    %17 = vector.extract_strided_slice %2 {offsets = [0, 1], sizes = [8, 1], strides = [1, 1]} : vector<8x9xf32> to vector<8x1xf32>
    %18 = vector.broadcast %17 : vector<8x1xf32> to vector<8x256xf32>
    %19 = arith.mulf %16, %18 : vector<8x256xf32>
    %20 = arith.addf %12, %19 : vector<8x256xf32>
    %c15_i32 = arith.constant 15 : i32
    %21 = tpu.dynamic_rotate %1 by %c15_i32 dim 1 : vector<8x256xf32>, i32 -> vector<8x256xf32>
    %22 = vector.extract_strided_slice %3 {offsets = [2, 0], sizes = [1, 256], strides = [1, 1]} : vector<9x256xf32> to vector<1x256xf32>
    %23 = vector.broadcast %22 : vector<1x256xf32> to vector<8x256xf32>
    %24 = arith.mulf %21, %23 : vector<8x256xf32>
    %25 = vector.extract_strided_slice %2 {offsets = [0, 2], sizes = [8, 1], strides = [1, 1]} : vector<8x9xf32> to vector<8x1xf32>
    %26 = vector.broadcast %25 : vector<8x1xf32> to vector<8x256xf32>
    %27 = arith.mulf %24, %26 : vector<8x256xf32>
    %28 = arith.addf %20, %27 : vector<8x256xf32>
    %c1_i32 = arith.constant 1 : i32
    %29 = tpu.dynamic_rotate %1 by %c1_i32 dim 1 : vector<8x256xf32>, i32 -> vector<8x256xf32>
    %30 = vector.extract_strided_slice %3 {offsets = [3, 0], sizes = [1, 256], strides = [1, 1]} : vector<9x256xf32> to vector<1x256xf32>
    %31 = vector.broadcast %30 : vector<1x256xf32> to vector<8x256xf32>
    %32 = arith.mulf %29, %31 : vector<8x256xf32>
    %33 = vector.extract_strided_slice %2 {offsets = [0, 3], sizes = [8, 1], strides = [1, 1]} : vector<8x9xf32> to vector<8x1xf32>
    %34 = vector.broadcast %33 : vector<8x1xf32> to vector<8x256xf32>
    %35 = arith.mulf %32, %34 : vector<8x256xf32>
    %36 = arith.addf %28, %35 : vector<8x256xf32>
    %37 = vector.extract_strided_slice %3 {offsets = [4, 0], sizes = [1, 256], strides = [1, 1]} : vector<9x256xf32> to vector<1x256xf32>
    %38 = vector.broadcast %37 : vector<1x256xf32> to vector<8x256xf32>
    %39 = arith.mulf %1, %38 : vector<8x256xf32>
    %40 = vector.extract_strided_slice %2 {offsets = [0, 4], sizes = [8, 1], strides = [1, 1]} : vector<8x9xf32> to vector<8x1xf32>
    %41 = vector.broadcast %40 : vector<8x1xf32> to vector<8x256xf32>
    %42 = arith.mulf %39, %41 : vector<8x256xf32>
    %43 = arith.addf %36, %42 : vector<8x256xf32>
    %c255_i32 = arith.constant 255 : i32
    %44 = tpu.dynamic_rotate %1 by %c255_i32 dim 1 : vector<8x256xf32>, i32 -> vector<8x256xf32>
    %45 = vector.extract_strided_slice %3 {offsets = [5, 0], sizes = [1, 256], strides = [1, 1]} : vector<9x256xf32> to vector<1x256xf32>
    %46 = vector.broadcast %45 : vector<1x256xf32> to vector<8x256xf32>
    %47 = arith.mulf %44, %46 : vector<8x256xf32>
    %48 = vector.extract_strided_slice %2 {offsets = [0, 5], sizes = [8, 1], strides = [1, 1]} : vector<8x9xf32> to vector<8x1xf32>
    %49 = vector.broadcast %48 : vector<8x1xf32> to vector<8x256xf32>
    %50 = arith.mulf %47, %49 : vector<8x256xf32>
    %51 = arith.addf %43, %50 : vector<8x256xf32>
    %c241_i32 = arith.constant 241 : i32
    %52 = tpu.dynamic_rotate %1 by %c241_i32 dim 1 : vector<8x256xf32>, i32 -> vector<8x256xf32>
    %53 = vector.extract_strided_slice %3 {offsets = [6, 0], sizes = [1, 256], strides = [1, 1]} : vector<9x256xf32> to vector<1x256xf32>
    %54 = vector.broadcast %53 : vector<1x256xf32> to vector<8x256xf32>
    %55 = arith.mulf %52, %54 : vector<8x256xf32>
    %56 = vector.extract_strided_slice %2 {offsets = [0, 6], sizes = [8, 1], strides = [1, 1]} : vector<8x9xf32> to vector<8x1xf32>
    %57 = vector.broadcast %56 : vector<8x1xf32> to vector<8x256xf32>
    %58 = arith.mulf %55, %57 : vector<8x256xf32>
    %59 = arith.addf %51, %58 : vector<8x256xf32>
    %c240_i32 = arith.constant 240 : i32
    %60 = tpu.dynamic_rotate %1 by %c240_i32 dim 1 : vector<8x256xf32>, i32 -> vector<8x256xf32>
    %61 = vector.extract_strided_slice %3 {offsets = [7, 0], sizes = [1, 256], strides = [1, 1]} : vector<9x256xf32> to vector<1x256xf32>
    %62 = vector.broadcast %61 : vector<1x256xf32> to vector<8x256xf32>
    %63 = arith.mulf %60, %62 : vector<8x256xf32>
    %64 = vector.extract_strided_slice %2 {offsets = [0, 7], sizes = [8, 1], strides = [1, 1]} : vector<8x9xf32> to vector<8x1xf32>
    %65 = vector.broadcast %64 : vector<8x1xf32> to vector<8x256xf32>
    %66 = arith.mulf %63, %65 : vector<8x256xf32>
    %67 = arith.addf %59, %66 : vector<8x256xf32>
    %c239_i32 = arith.constant 239 : i32
    %68 = tpu.dynamic_rotate %1 by %c239_i32 dim 1 : vector<8x256xf32>, i32 -> vector<8x256xf32>
    %69 = vector.extract_strided_slice %3 {offsets = [8, 0], sizes = [1, 256], strides = [1, 1]} : vector<9x256xf32> to vector<1x256xf32>
    %70 = vector.broadcast %69 : vector<1x256xf32> to vector<8x256xf32>
    %71 = arith.mulf %68, %70 : vector<8x256xf32>
    %72 = vector.extract_strided_slice %2 {offsets = [0, 8], sizes = [8, 1], strides = [1, 1]} : vector<8x9xf32> to vector<8x1xf32>
    %73 = vector.broadcast %72 : vector<8x1xf32> to vector<8x256xf32>
    %74 = arith.mulf %71, %73 : vector<8x256xf32>
    %75 = arith.addf %67, %74 : vector<8x256xf32>
    %cst_6 = arith.constant 5.000000e-01 : f32
    %76 = vector.broadcast %cst_6 : f32 to vector<8x256xf32>
    %77 = arith.mulf %76, %75 : vector<8x256xf32>
    %cst_7 = arith.constant 0.707106769 : f32
    %78 = vector.broadcast %cst_7 : f32 to vector<8x256xf32>
    %79 = arith.mulf %75, %78 : vector<8x256xf32>
    %80 = math.erf %79 : vector<8x256xf32>
    %cst_8 = arith.constant 1.000000e+00 : f32
    %81 = vector.broadcast %cst_8 : f32 to vector<8x256xf32>
    %82 = arith.addf %81, %80 : vector<8x256xf32>
    %83 = arith.mulf %77, %82 : vector<8x256xf32>
    %c0_9 = arith.constant 0 : index
    %c0_10 = arith.constant 0 : index
    %84 = vector.load %arg4[%c0_9, %c0_10] : memref<256x256xf32, #tpu.memory_space<vmem>>, vector<256x256xf32>
    %cst_11 = arith.constant dense<0.000000e+00> : vector<8x256xf32>
    %85 = tpu.matmul %1, %84, %cst_11 {dimension_numbers = #tpu.dot_dimension_numbers<[1], [0], [0], [1], [0, 0, 1, 1], [], []>} : vector<8x256xf32>, vector<256x256xf32>, vector<8x256xf32> -> vector<8x256xf32>
    %86 = vector.extract_strided_slice %85 {offsets = [0, 0], sizes = [8, 9], strides = [1, 1]} : vector<8x256xf32> to vector<8x9xf32>
    %c0_12 = arith.constant 0 : index
    %c0_13 = arith.constant 0 : index
    %c0_14 = arith.constant 0 : index
    %87 = vector.load %arg5[%c0_12, %c0_13, %c0_14] : memref<2x8x8xf32, #tpu.memory_space<vmem>>, vector<1x8x8xf32>
    %88 = vector.shape_cast %87 : vector<1x8x8xf32> to vector<8x8xf32>
    %cst_15 = arith.constant dense<0.000000e+00> : vector<8x9xf32>
    %89 = tpu.matmul %88, %86, %cst_15 {dimension_numbers = #tpu.dot_dimension_numbers<[1], [0], [0], [1], [0, 0, 1, 1], [], []>} : vector<8x8xf32>, vector<8x9xf32>, vector<8x9xf32> -> vector<8x9xf32>
    %c0_16 = arith.constant 0 : index
    %c0_17 = arith.constant 0 : index
    %c0_18 = arith.constant 0 : index
    %90 = vector.load %arg6[%c0_16, %c0_17, %c0_18] : memref<2x8x1xf32, #tpu.memory_space<vmem>>, vector<1x8x1xf32>
    %91 = vector.shape_cast %90 : vector<1x8x1xf32> to vector<8x1xf32>
    %92 = vector.broadcast %91 : vector<8x1xf32> to vector<8x9xf32>
    %93 = arith.addf %89, %92 : vector<8x9xf32>
    %cst_19 = arith.constant 5.000000e-01 : f32
    %94 = vector.broadcast %cst_19 : f32 to vector<8x9xf32>
    %95 = arith.mulf %94, %93 : vector<8x9xf32>
    %cst_20 = arith.constant 0.707106769 : f32
    %96 = vector.broadcast %cst_20 : f32 to vector<8x9xf32>
    %97 = arith.mulf %93, %96 : vector<8x9xf32>
    %98 = math.erf %97 : vector<8x9xf32>
    %cst_21 = arith.constant 1.000000e+00 : f32
    %99 = vector.broadcast %cst_21 : f32 to vector<8x9xf32>
    %100 = arith.addf %99, %98 : vector<8x9xf32>
    %101 = arith.mulf %95, %100 : vector<8x9xf32>
    %c0_22 = arith.constant 0 : index
    %c0_23 = arith.constant 0 : index
    %102 = vector.load %arg8[%c0_22, %c0_23] : memref<9x9xf32, #tpu.memory_space<vmem>>, vector<9x9xf32>
    %cst_24 = arith.constant dense<0.000000e+00> : vector<8x9xf32>
    %103 = tpu.matmul %101, %102, %cst_24 {dimension_numbers = #tpu.dot_dimension_numbers<[1], [0], [0], [1], [0, 0, 1, 1], [], []>} : vector<8x9xf32>, vector<9x9xf32>, vector<8x9xf32> -> vector<8x9xf32>
    %c0_25 = arith.constant 0 : index
    %c0_26 = arith.constant 0 : index
    %c0_27 = arith.constant 0 : index
    %104 = vector.load %arg7[%c0_25, %c0_26, %c0_27] : memref<2x8x9xf32, #tpu.memory_space<vmem>>, vector<1x8x9xf32>
    %105 = vector.shape_cast %104 : vector<1x8x9xf32> to vector<8x9xf32>
    %cst_28 = arith.constant 0.000000e+00 : f32
    %106 = vector.broadcast %cst_28 : f32 to vector<8x1xf32>
    %107 = vector.extract_strided_slice %105 {offsets = [0, 0], sizes = [8, 1], strides = [1, 1]} : vector<8x9xf32> to vector<8x1xf32>
    %108 = vector.extract_strided_slice %103 {offsets = [0, 0], sizes = [8, 1], strides = [1, 1]} : vector<8x9xf32> to vector<8x1xf32>
    %109 = arith.mulf %107, %108 : vector<8x1xf32>
    %110 = arith.addf %106, %109 : vector<8x1xf32>
    %111 = vector.extract_strided_slice %105 {offsets = [0, 1], sizes = [8, 1], strides = [1, 1]} : vector<8x9xf32> to vector<8x1xf32>
    %112 = vector.extract_strided_slice %103 {offsets = [0, 1], sizes = [8, 1], strides = [1, 1]} : vector<8x9xf32> to vector<8x1xf32>
    %113 = arith.mulf %111, %112 : vector<8x1xf32>
    %114 = arith.addf %110, %113 : vector<8x1xf32>
    %115 = vector.extract_strided_slice %105 {offsets = [0, 2], sizes = [8, 1], strides = [1, 1]} : vector<8x9xf32> to vector<8x1xf32>
    %116 = vector.extract_strided_slice %103 {offsets = [0, 2], sizes = [8, 1], strides = [1, 1]} : vector<8x9xf32> to vector<8x1xf32>
    %117 = arith.mulf %115, %116 : vector<8x1xf32>
    %118 = arith.addf %114, %117 : vector<8x1xf32>
    %119 = vector.extract_strided_slice %105 {offsets = [0, 3], sizes = [8, 1], strides = [1, 1]} : vector<8x9xf32> to vector<8x1xf32>
    %120 = vector.extract_strided_slice %103 {offsets = [0, 3], sizes = [8, 1], strides = [1, 1]} : vector<8x9xf32> to vector<8x1xf32>
    %121 = arith.mulf %119, %120 : vector<8x1xf32>
    %122 = arith.addf %118, %121 : vector<8x1xf32>
    %123 = vector.extract_strided_slice %105 {offsets = [0, 4], sizes = [8, 1], strides = [1, 1]} : vector<8x9xf32> to vector<8x1xf32>
    %124 = vector.extract_strided_slice %103 {offsets = [0, 4], sizes = [8, 1], strides = [1, 1]} : vector<8x9xf32> to vector<8x1xf32>
    %125 = arith.mulf %123, %124 : vector<8x1xf32>
    %126 = arith.addf %122, %125 : vector<8x1xf32>
    %127 = vector.extract_strided_slice %105 {offsets = [0, 5], sizes = [8, 1], strides = [1, 1]} : vector<8x9xf32> to vector<8x1xf32>
    %128 = vector.extract_strided_slice %103 {offsets = [0, 5], sizes = [8, 1], strides = [1, 1]} : vector<8x9xf32> to vector<8x1xf32>
    %129 = arith.mulf %127, %128 : vector<8x1xf32>
    %130 = arith.addf %126, %129 : vector<8x1xf32>
    %131 = vector.extract_strided_slice %105 {offsets = [0, 6], sizes = [8, 1], strides = [1, 1]} : vector<8x9xf32> to vector<8x1xf32>
    %132 = vector.extract_strided_slice %103 {offsets = [0, 6], sizes = [8, 1], strides = [1, 1]} : vector<8x9xf32> to vector<8x1xf32>
    %133 = arith.mulf %131, %132 : vector<8x1xf32>
    %134 = arith.addf %130, %133 : vector<8x1xf32>
    %135 = vector.extract_strided_slice %105 {offsets = [0, 7], sizes = [8, 1], strides = [1, 1]} : vector<8x9xf32> to vector<8x1xf32>
    %136 = vector.extract_strided_slice %103 {offsets = [0, 7], sizes = [8, 1], strides = [1, 1]} : vector<8x9xf32> to vector<8x1xf32>
    %137 = arith.mulf %135, %136 : vector<8x1xf32>
    %138 = arith.addf %134, %137 : vector<8x1xf32>
    %139 = vector.extract_strided_slice %105 {offsets = [0, 8], sizes = [8, 1], strides = [1, 1]} : vector<8x9xf32> to vector<8x1xf32>
    %140 = vector.extract_strided_slice %103 {offsets = [0, 8], sizes = [8, 1], strides = [1, 1]} : vector<8x9xf32> to vector<8x1xf32>
    %141 = arith.mulf %139, %140 : vector<8x1xf32>
    %142 = arith.addf %138, %141 : vector<8x1xf32>
    %cst_29 = arith.constant 5.000000e-01 : f32
    %143 = vector.broadcast %cst_29 : f32 to vector<8x1xf32>
    %144 = arith.mulf %143, %142 : vector<8x1xf32>
    %cst_30 = arith.constant 0.707106769 : f32
    %145 = vector.broadcast %cst_30 : f32 to vector<8x1xf32>
    %146 = arith.mulf %142, %145 : vector<8x1xf32>
    %147 = math.erf %146 : vector<8x1xf32>
    %cst_31 = arith.constant 1.000000e+00 : f32
    %148 = vector.broadcast %cst_31 : f32 to vector<8x1xf32>
    %149 = arith.addf %148, %147 : vector<8x1xf32>
    %150 = arith.mulf %144, %149 : vector<8x1xf32>
    %151 = vector.shape_cast %150 : vector<8x1xf32> to vector<8x1xf32>
    %152 = vector.broadcast %151 : vector<8x1xf32> to vector<8x256xf32>
    %153 = vector.extract_strided_slice %85 {offsets = [0, 128], sizes = [8, 36], strides = [1, 1]} : vector<8x256xf32> to vector<8x36xf32>
    %c1 = arith.constant 1 : index
    %c0_32 = arith.constant 0 : index
    %c0_33 = arith.constant 0 : index
    %154 = vector.load %arg5[%c1, %c0_32, %c0_33] : memref<2x8x8xf32, #tpu.memory_space<vmem>>, vector<1x8x8xf32>
    %155 = vector.shape_cast %154 : vector<1x8x8xf32> to vector<8x8xf32>
    %cst_34 = arith.constant dense<0.000000e+00> : vector<8x36xf32>
    %156 = tpu.matmul %155, %153, %cst_34 {dimension_numbers = #tpu.dot_dimension_numbers<[1], [0], [0], [1], [0, 0, 1, 1], [], []>} : vector<8x8xf32>, vector<8x36xf32>, vector<8x36xf32> -> vector<8x36xf32>
    %c1_35 = arith.constant 1 : index
    %c0_36 = arith.constant 0 : index
    %c0_37 = arith.constant 0 : index
    %157 = vector.load %arg6[%c1_35, %c0_36, %c0_37] : memref<2x8x1xf32, #tpu.memory_space<vmem>>, vector<1x8x1xf32>
    %158 = vector.shape_cast %157 : vector<1x8x1xf32> to vector<8x1xf32>
    %159 = vector.broadcast %158 : vector<8x1xf32> to vector<8x36xf32>
    %160 = arith.addf %156, %159 : vector<8x36xf32>
    %cst_38 = arith.constant 5.000000e-01 : f32
    %161 = vector.broadcast %cst_38 : f32 to vector<8x36xf32>
    %162 = arith.mulf %161, %160 : vector<8x36xf32>
    %cst_39 = arith.constant 0.707106769 : f32
    %163 = vector.broadcast %cst_39 : f32 to vector<8x36xf32>
    %164 = arith.mulf %160, %163 : vector<8x36xf32>
    %165 = math.erf %164 : vector<8x36xf32>
    %cst_40 = arith.constant 1.000000e+00 : f32
    %166 = vector.broadcast %cst_40 : f32 to vector<8x36xf32>
    %167 = arith.addf %166, %165 : vector<8x36xf32>
    %168 = arith.mulf %162, %167 : vector<8x36xf32>
    %c0_41 = arith.constant 0 : index
    %c0_42 = arith.constant 0 : index
    %169 = vector.load %arg10[%c0_41, %c0_42] : memref<36x144xf32, #tpu.memory_space<vmem>>, vector<36x144xf32>
    %cst_43 = arith.constant dense<0.000000e+00> : vector<8x144xf32>
    %170 = tpu.matmul %168, %169, %cst_43 {dimension_numbers = #tpu.dot_dimension_numbers<[1], [0], [0], [1], [0, 0, 1, 1], [], []>} : vector<8x36xf32>, vector<36x144xf32>, vector<8x144xf32> -> vector<8x144xf32>
    %c1_44 = arith.constant 1 : index
    %c0_45 = arith.constant 0 : index
    %c0_46 = arith.constant 0 : index
    %171 = vector.load %arg7[%c1_44, %c0_45, %c0_46] : memref<2x8x9xf32, #tpu.memory_space<vmem>>, vector<1x8x9xf32>
    %172 = vector.shape_cast %171 : vector<1x8x9xf32> to vector<8x9xf32>
    %cst_47 = arith.constant 0.000000e+00 : f32
    %173 = vector.broadcast %cst_47 : f32 to vector<8x16xf32>
    %174 = vector.extract_strided_slice %172 {offsets = [0, 0], sizes = [8, 1], strides = [1, 1]} : vector<8x9xf32> to vector<8x1xf32>
    %175 = vector.extract_strided_slice %170 {offsets = [0, 0], sizes = [8, 16], strides = [1, 1]} : vector<8x144xf32> to vector<8x16xf32>
    %176 = vector.broadcast %174 : vector<8x1xf32> to vector<8x16xf32>
    %177 = arith.mulf %176, %175 : vector<8x16xf32>
    %178 = arith.addf %173, %177 : vector<8x16xf32>
    %179 = vector.extract_strided_slice %172 {offsets = [0, 1], sizes = [8, 1], strides = [1, 1]} : vector<8x9xf32> to vector<8x1xf32>
    %180 = vector.extract_strided_slice %170 {offsets = [0, 16], sizes = [8, 16], strides = [1, 1]} : vector<8x144xf32> to vector<8x16xf32>
    %181 = vector.broadcast %179 : vector<8x1xf32> to vector<8x16xf32>
    %182 = arith.mulf %181, %180 : vector<8x16xf32>
    %183 = arith.addf %178, %182 : vector<8x16xf32>
    %184 = vector.extract_strided_slice %172 {offsets = [0, 2], sizes = [8, 1], strides = [1, 1]} : vector<8x9xf32> to vector<8x1xf32>
    %185 = vector.extract_strided_slice %170 {offsets = [0, 32], sizes = [8, 16], strides = [1, 1]} : vector<8x144xf32> to vector<8x16xf32>
    %186 = vector.broadcast %184 : vector<8x1xf32> to vector<8x16xf32>
    %187 = arith.mulf %186, %185 : vector<8x16xf32>
    %188 = arith.addf %183, %187 : vector<8x16xf32>
    %189 = vector.extract_strided_slice %172 {offsets = [0, 3], sizes = [8, 1], strides = [1, 1]} : vector<8x9xf32> to vector<8x1xf32>
    %190 = vector.extract_strided_slice %170 {offsets = [0, 48], sizes = [8, 16], strides = [1, 1]} : vector<8x144xf32> to vector<8x16xf32>
    %191 = vector.broadcast %189 : vector<8x1xf32> to vector<8x16xf32>
    %192 = arith.mulf %191, %190 : vector<8x16xf32>
    %193 = arith.addf %188, %192 : vector<8x16xf32>
    %194 = vector.extract_strided_slice %172 {offsets = [0, 4], sizes = [8, 1], strides = [1, 1]} : vector<8x9xf32> to vector<8x1xf32>
    %195 = vector.extract_strided_slice %170 {offsets = [0, 64], sizes = [8, 16], strides = [1, 1]} : vector<8x144xf32> to vector<8x16xf32>
    %196 = vector.broadcast %194 : vector<8x1xf32> to vector<8x16xf32>
    %197 = arith.mulf %196, %195 : vector<8x16xf32>
    %198 = arith.addf %193, %197 : vector<8x16xf32>
    %199 = vector.extract_strided_slice %172 {offsets = [0, 5], sizes = [8, 1], strides = [1, 1]} : vector<8x9xf32> to vector<8x1xf32>
    %200 = vector.extract_strided_slice %170 {offsets = [0, 80], sizes = [8, 16], strides = [1, 1]} : vector<8x144xf32> to vector<8x16xf32>
    %201 = vector.broadcast %199 : vector<8x1xf32> to vector<8x16xf32>
    %202 = arith.mulf %201, %200 : vector<8x16xf32>
    %203 = arith.addf %198, %202 : vector<8x16xf32>
    %204 = vector.extract_strided_slice %172 {offsets = [0, 6], sizes = [8, 1], strides = [1, 1]} : vector<8x9xf32> to vector<8x1xf32>
    %205 = vector.extract_strided_slice %170 {offsets = [0, 96], sizes = [8, 16], strides = [1, 1]} : vector<8x144xf32> to vector<8x16xf32>
    %206 = vector.broadcast %204 : vector<8x1xf32> to vector<8x16xf32>
    %207 = arith.mulf %206, %205 : vector<8x16xf32>
    %208 = arith.addf %203, %207 : vector<8x16xf32>
    %209 = vector.extract_strided_slice %172 {offsets = [0, 7], sizes = [8, 1], strides = [1, 1]} : vector<8x9xf32> to vector<8x1xf32>
    %210 = vector.extract_strided_slice %170 {offsets = [0, 112], sizes = [8, 16], strides = [1, 1]} : vector<8x144xf32> to vector<8x16xf32>
    %211 = vector.broadcast %209 : vector<8x1xf32> to vector<8x16xf32>
    %212 = arith.mulf %211, %210 : vector<8x16xf32>
    %213 = arith.addf %208, %212 : vector<8x16xf32>
    %214 = vector.extract_strided_slice %172 {offsets = [0, 8], sizes = [8, 1], strides = [1, 1]} : vector<8x9xf32> to vector<8x1xf32>
    %215 = vector.extract_strided_slice %170 {offsets = [0, 128], sizes = [8, 16], strides = [1, 1]} : vector<8x144xf32> to vector<8x16xf32>
    %216 = vector.broadcast %214 : vector<8x1xf32> to vector<8x16xf32>
    %217 = arith.mulf %216, %215 : vector<8x16xf32>
    %218 = arith.addf %213, %217 : vector<8x16xf32>
    %cst_48 = arith.constant 5.000000e-01 : f32
    %219 = vector.broadcast %cst_48 : f32 to vector<8x16xf32>
    %220 = arith.mulf %219, %218 : vector<8x16xf32>
    %cst_49 = arith.constant 0.707106769 : f32
    %221 = vector.broadcast %cst_49 : f32 to vector<8x16xf32>
    %222 = arith.mulf %218, %221 : vector<8x16xf32>
    %223 = math.erf %222 : vector<8x16xf32>
    %cst_50 = arith.constant 1.000000e+00 : f32
    %224 = vector.broadcast %cst_50 : f32 to vector<8x16xf32>
    %225 = arith.addf %224, %223 : vector<8x16xf32>
    %226 = arith.mulf %220, %225 : vector<8x16xf32>
    %c0_51 = arith.constant 0 : index
    %c0_52 = arith.constant 0 : index
    %227 = vector.load %arg11[%c0_51, %c0_52] : memref<16x256xf32, #tpu.memory_space<vmem>>, vector<16x256xf32>
    %cst_53 = arith.constant dense<0.000000e+00> : vector<8x256xf32>
    %228 = tpu.matmul %226, %227, %cst_53 {dimension_numbers = #tpu.dot_dimension_numbers<[1], [0], [0], [1], [0, 0, 1, 1], [], []>} : vector<8x16xf32>, vector<16x256xf32>, vector<8x256xf32> -> vector<8x256xf32>
    %229 = vector.extract_strided_slice %83 {offsets = [0, 0], sizes = [4, 256], strides = [1, 1]} : vector<8x256xf32> to vector<4x256xf32>
    %230 = vector.extract_strided_slice %152 {offsets = [0, 0], sizes = [4, 256], strides = [1, 1]} : vector<8x256xf32> to vector<4x256xf32>
    %231 = vector.extract_strided_slice %228 {offsets = [0, 0], sizes = [4, 256], strides = [1, 1]} : vector<8x256xf32> to vector<4x256xf32>
    %232 = vector.extract_strided_slice %83 {offsets = [4, 0], sizes = [4, 256], strides = [1, 1]} : vector<8x256xf32> to vector<4x256xf32>
    %233 = vector.extract_strided_slice %152 {offsets = [4, 0], sizes = [4, 256], strides = [1, 1]} : vector<8x256xf32> to vector<4x256xf32>
    %234 = vector.extract_strided_slice %228 {offsets = [4, 0], sizes = [4, 256], strides = [1, 1]} : vector<8x256xf32> to vector<4x256xf32>
    %235 = tpu.concatenate %229, %230, %231, %232, %233, %234 in 0 : vector<4x256xf32>, vector<4x256xf32>, vector<4x256xf32>, vector<4x256xf32>, vector<4x256xf32>, vector<4x256xf32> -> vector<24x256xf32>
    %c0_54 = arith.constant 0 : index
    %c0_55 = arith.constant 0 : index
    %c0_56 = arith.constant 0 : index
    %236 = vector.load %arg12[%c0_54, %c0_55, %c0_56] : memref<1x24x256xf32, #tpu.memory_space<vmem>>, vector<1x24x256xf32>
    %237 = vector.shape_cast %236 : vector<1x24x256xf32> to vector<24x256xf32>
    %238 = vector.shape_cast %235 : vector<24x256xf32> to vector<1x24x256xf32>
    tpu.vector_store %arg12[%c0_54, %c0_55, %c0_56], %238 {strides = array<i32>} : memref<1x24x256xf32, #tpu.memory_space<vmem>>, vector<1x24x256xf32>,
    return
  }
  func.func @transform_0(%arg0: i32) -> (i32, i32, i32) {
    %c0_i32 = arith.constant 0 : i32
    %c0_i32_0 = arith.constant 0 : i32
    %c0_i32_1 = arith.constant 0 : i32
    return %arg0, %c0_i32, %c0_i32_0 : i32, i32, i32
  }
  func.func @transform_1(%arg0: i32) -> (i32, i32) {
    %c0_i32 = arith.constant 0 : i32
    %c0_i32_0 = arith.constant 0 : i32
    %c0_i32_1 = arith.constant 0 : i32
    return %c0_i32, %c0_i32_0 : i32, i32
  }
  func.func @transform_2(%arg0: i32) -> (i32, i32) {
    %c0_i32 = arith.constant 0 : i32
    %c0_i32_0 = arith.constant 0 : i32
    %c0_i32_1 = arith.constant 0 : i32
    return %c0_i32, %c0_i32_0 : i32, i32
  }
  func.func @transform_3(%arg0: i32) -> (i32, i32) {
    %c0_i32 = arith.constant 0 : i32
    %c0_i32_0 = arith.constant 0 : i32
    %c0_i32_1 = arith.constant 0 : i32
    return %c0_i32, %c0_i32_0 : i32, i32
  }
  func.func @transform_4(%arg0: i32) -> (i32, i32, i32) {
    %c0_i32 = arith.constant 0 : i32
    %c0_i32_0 = arith.constant 0 : i32
    %c0_i32_1 = arith.constant 0 : i32
    %c0_i32_2 = arith.constant 0 : i32
    return %c0_i32, %c0_i32_0, %c0_i32_1 : i32, i32, i32
  }
  func.func @transform_5(%arg0: i32) -> (i32, i32, i32) {
    %c0_i32 = arith.constant 0 : i32
    %c0_i32_0 = arith.constant 0 : i32
    %c0_i32_1 = arith.constant 0 : i32
    %c0_i32_2 = arith.constant 0 : i32
    return %c0_i32, %c0_i32_0, %c0_i32_1 : i32, i32, i32
  }
  func.func @transform_6(%arg0: i32) -> (i32, i32, i32) {
    %c0_i32 = arith.constant 0 : i32
    %c0_i32_0 = arith.constant 0 : i32
    %c0_i32_1 = arith.constant 0 : i32
    %c0_i32_2 = arith.constant 0 : i32
    return %c0_i32, %c0_i32_0, %c0_i32_1 : i32, i32, i32
  }
  func.func @transform_7(%arg0: i32) -> (i32, i32) {
    %c0_i32 = arith.constant 0 : i32
    %c0_i32_0 = arith.constant 0 : i32
    %c0_i32_1 = arith.constant 0 : i32
    return %c0_i32, %c0_i32_0 : i32, i32
  }
  func.func @transform_8(%arg0: i32) -> (i32, i32) {
    %c0_i32 = arith.constant 0 : i32
    %c0_i32_0 = arith.constant 0 : i32
    %c0_i32_1 = arith.constant 0 : i32
    return %c0_i32, %c0_i32_0 : i32, i32
  }
  func.func @transform_9(%arg0: i32) -> (i32, i32) {
    %c0_i32 = arith.constant 0 : i32
    %c0_i32_0 = arith.constant 0 : i32
    %c0_i32_1 = arith.constant 0 : i32
    return %c0_i32, %c0_i32_0 : i32, i32
  }
  func.func @transform_10(%arg0: i32) -> (i32, i32) {
    %c0_i32 = arith.constant 0 : i32
    %c0_i32_0 = arith.constant 0 : i32
    %c0_i32_1 = arith.constant 0 : i32
    return %c0_i32, %c0_i32_0 : i32, i32
  }
  func.func @transform_11(%arg0: i32) -> (i32, i32, i32) {
    %c0_i32 = arith.constant 0 : i32
    %c0_i32_0 = arith.constant 0 : i32
    %c0_i32_1 = arith.constant 0 : i32
    return %arg0, %c0_i32, %c0_i32_0 : i32, i32, i32
  }
}

</mosaic_0001>

<bundles_post_ra>
// kernel: tpu_custom_call.1
= control target key start
LH: loop header
LB: loop body
LE: loop exit
PB: predicated region body
PF: predicated region fallthrough
CT: control target
= control target key end

     0   :  { %16 = vsyncpa [#allocation3], 0  ;;  %s1892_s0 = inlined_call_operand.vmem [shape: f32[1,8,256], index: 0, kind: input, shape index: {}]   ;;  %s1893_s1 = inlined_call_operand.hbm [shape: f32[8,9], index: 1, kind: input, shape index: {}]   ;;  %s1894_s2 = inlined_call_operand.hbm [shape: f32[9,256], index: 2, kind: input, shape index: {}]   ;;  %s1895_s3 = inlined_call_operand.hbm [shape: f32[256,256], index: 3, kind: input, shape index: {}]   ;;  %s1896_s4 = inlined_call_operand.hbm [shape: f32[2,8,8], index: 4, kind: input, shape index: {}]   ;;  %s1897_s5 = inlined_call_operand.vmem [shape: f32[2,8,1], index: 5, kind: input, shape index: {}]   ;;  %s1898_s6 = inlined_call_operand.hbm [shape: f32[2,8,9], index: 6, kind: input, shape index: {}]   ;;  %s1899_s7 = inlined_call_operand.hbm [shape: f32[9,9], index: 7, kind: input, shape index: {}]   ;;  %s1900_s8 = inlined_call_operand.vmem [shape: f32[1,256], index: 8, kind: input, shape index: {}]   ;;  %s1901_s9 = inlined_call_operand.hbm [shape: f32[36,144], index: 9, kind: input, shape index: {}]   ;;  %s1902_s10 = inlined_call_operand.vmem [shape: f32[16,256], index: 10, kind: input, shape index: {}]   ;;  %s1903_s11 = inlined_call_operand.hbm [shape: f32[1,24,256], index: 11, kind: output, shape index: {}]  }
   0x1   :  { %17 = vsyncpa [#allocation6], 0 }
   0x2   :  { %18 = vsyncpa [#allocation9], 0 }
   0x3   :  { %19 = vsyncpa [#allocation12], 0 }
   0x4   :  { %20 = vsyncpa [#allocation4], 0  ;;  %s1475_s17 = smov [#allocation5]   ;;  %s1289_s8 = scalar_lea.hbm %s1894_s2, 512 }
   0x5   :  { %s38_s18 = sshll.u32 %s1475_s17, 4  ;;  %p1290_p0 = scmp.ne.s32.totalorder %s1894_s2, %s1289_s8  ;;  %s39_s18 = int_to_ptr.vmem [resolvable:$true] %s38_s18 }
   0x6   :  { %p1293_p1 = scmp.lt.u32.totalorder %s1289_s8, %s1894_s2 }
   0x8   :  { %p1295_p2 = pnand %p1293_p1, %p1290_p0 }
   0xa   :  { %1298 = shalt.err (!%p1295_p2)
}
   0xb   :  { %s1299_s25 = scalar_lea.vmem %s39_s18, 512  ;;  %p1304_p4 = scmp.lt.s32.totalorder %s39_s18, %s39_s18 }
   0xc   :  { %p1300_p3 = scmp.ne.s32.totalorder %s39_s18, %s1299_s25  ;;  %p1305_p5 = scmp.lt.s32.totalorder %s1299_s25, %s1299_s25 }
   0xe   :  { %p1306_p6 = por %p1305_p5, %p1304_p4 }
  0x10   :  { %p1307_p7 = pnand %p1306_p6, %p1300_p3 }
  0x12   :  { %1310 = shalt.err (!%p1307_p7)
}
  0x13   :  { %s1476_s26 = smov 256   ;;  %s1477_s27 = smov 16  }
  0x14   :  { %44 = dma.hbm_to_vmem [thread:$0]  %s1894_s2, 512, %s39_s18, [#allocation6], %s1476_s26, %s1476_s26, %s1477_s27  }
  0x15   :  { %s1478_s30 = smov [#allocation8]   ;;  %s1311_s15 = scalar_lea.hbm %s1896_s4, 256 }
  0x16   :  { %s62_s12 = sshll.u32 %s1478_s30, 4  ;;  %p1312_p8 = scmp.ne.s32.totalorder %s1896_s4, %s1311_s15  ;;  %s63_s12 = int_to_ptr.vmem [resolvable:$true] %s62_s12 }
  0x17   :  { %p1315_p9 = scmp.lt.u32.totalorder %s1311_s15, %s1896_s4 }
  0x19   :  { %p1317_p10 = pnand %p1315_p9, %p1312_p8 }
  0x1b   :  { %1320 = shalt.err (!%p1317_p10)
}
  0x1c   :  { %s1321_s8 = scalar_lea.vmem %s63_s12, 256  ;;  %p1326_p12 = scmp.lt.s32.totalorder %s63_s12, %s63_s12 }
  0x1d   :  { %p1322_p11 = scmp.ne.s32.totalorder %s63_s12, %s1321_s8  ;;  %p1327_p13 = scmp.lt.s32.totalorder %s1321_s8, %s1321_s8 }
  0x1f   :  { %p1328_p0 = por %p1327_p13, %p1326_p12 }
  0x21   :  { %p1329_p1 = pnand %p1328_p0, %p1322_p11 }
  0x23   :  { %1332 = shalt.err (!%p1329_p1)
}
  0x24   :  { %s1479_s2 = smov 128   ;;  %s1480_s18 = smov 8  }
  0x25   :  { %68 = dma.hbm_to_vmem [thread:$0]  %s1896_s4, 256, %s63_s12, [#allocation9], %s1479_s2, %s1479_s2, %s1480_s18  }
  0x26   :  { %s1481_s23 = smov [#allocation11]   ;;  %s1482_s25 = smov [#allocation2]  }
  0x27   :  { %s88_s24 = sshll.u32 %s1481_s23, 4  ;;  %s29_s28 = sshll.u32 %s1482_s25, 4  ;;  %s89_s24 = int_to_ptr.vmem [resolvable:$true] %s88_s24  ;;  %s30_s28 = int_to_ptr.vmem [resolvable:$true] %s29_s28 }
  0x28   :  { %s1333_s13 = scalar_lea.hbm %s1899_s7, 256 }
  0x29   :  { %p1334_p2 = scmp.ne.s32.totalorder %s1899_s7, %s1333_s13  ;;  %p1337_p3 = scmp.lt.u32.totalorder %s1333_s13, %s1899_s7 }
  0x2b   :  { %p1339_p4 = pnand %p1337_p3, %p1334_p2 }
  0x2d   :  { %1342 = shalt.err (!%p1339_p4)
}
  0x2e   :  { %s1343_s4 = scalar_lea.vmem %s89_s24, 256  ;;  %p1348_p6 = scmp.lt.s32.totalorder %s89_s24, %s89_s24 }
  0x2f   :  { %p1344_p5 = scmp.ne.s32.totalorder %s89_s24, %s1343_s4  ;;  %p1349_p7 = scmp.lt.s32.totalorder %s1343_s4, %s1343_s4 }
  0x31   :  { %p1350_p8 = por %p1349_p7, %p1348_p6 }
  0x33   :  { %p1351_p9 = pnand %p1350_p8, %p1344_p5 }
  0x35   :  { %1354 = shalt.err (!%p1351_p9)
}
  0x36   :  { %94 = dma.hbm_to_vmem [thread:$0]  %s1899_s7, 256, %s89_s24, [#allocation12], %s1479_s2, %s1479_s2, %s1480_s18  }
  0x37   :  { %s1355_s21 = scalar_lea.hbm %s1893_s1, 128 }
  0x38   :  { %p1356_p10 = scmp.ne.s32.totalorder %s1893_s1, %s1355_s21  ;;  %p1359_p11 = scmp.lt.u32.totalorder %s1355_s21, %s1893_s1 }
  0x3a   :  { %p1361_p12 = pnand %p1359_p11, %p1356_p10 }
  0x3c   :  { %1364 = shalt.err (!%p1361_p12)
}
  0x3d   :  { %s1365_s30 = scalar_lea.vmem %s30_s28, 128  ;;  %p1370_p0 = scmp.lt.s32.totalorder %s30_s28, %s30_s28 }
  0x3e   :  { %p1366_p13 = scmp.ne.s32.totalorder %s30_s28, %s1365_s30  ;;  %p1371_p1 = scmp.lt.s32.totalorder %s1365_s30, %s1365_s30 }
  0x40   :  { %p1372_p2 = por %p1371_p1, %p1370_p0 }
  0x42   :  { %p1373_p3 = pnand %p1372_p2, %p1366_p13 }
  0x44   :  { %1376 = shalt.err (!%p1373_p3)
}
  0x45   :  { %32 = dma.hbm_to_vmem [thread:$0]  %s1893_s1, 128, %s30_s28, [#allocation3]  }
  0x46   :  { %s1483_s13 = smov [#allocation7]   ;;  %s1484_s15 = smov [#allocation10]  }
  0x47   :  { %s50_s14 = sshll.u32 %s1483_s13, 4  ;;  %s76_s16 = sshll.u32 %s1484_s15, 4  ;;  %s51_s14 = int_to_ptr.vmem [resolvable:$true] %s50_s14  ;;  %s1636_s16 = int_to_ptr.vmem [resolvable:$true] %s76_s16 }
  0x48   :  { %s1377_s12 = scalar_lea.hbm %s1895_s3, 8192 }
  0x49   :  { %p1378_p4 = scmp.ne.s32.totalorder %s1895_s3, %s1377_s12  ;;  %p1381_p5 = scmp.lt.u32.totalorder %s1377_s12, %s1895_s3 }
  0x4b   :  { %p1383_p6 = pnand %p1381_p5, %p1378_p4 }
  0x4d   :  { %1386 = shalt.err (!%p1383_p6)
}
  0x4e   :  { %s1387_s1 = scalar_lea.vmem %s51_s14, 8192  ;;  %p1392_p8 = scmp.lt.s32.totalorder %s51_s14, %s51_s14 }
  0x4f   :  { %p1388_p7 = scmp.ne.s32.totalorder %s51_s14, %s1387_s1  ;;  %p1393_p9 = scmp.lt.s32.totalorder %s1387_s1, %s1387_s1 }
  0x51   :  { %p1394_p10 = por %p1393_p9, %p1392_p8 }
  0x53   :  { %p1395_p11 = pnand %p1394_p10, %p1388_p7 }
  0x55   :  { %1398 = shalt.err (!%p1395_p11)
}
  0x56   :  { %56 = dma.hbm_to_vmem [thread:$0]  %s1895_s3, 8192, %s51_s14, [#allocation6], %s1476_s26, %s1476_s26, %s1477_s27  }
  0x57   :  { %s1399_s29 = scalar_lea.hbm %s1898_s6, 256 }
  0x58   :  { %p1400_p12 = scmp.ne.s32.totalorder %s1898_s6, %s1399_s29  ;;  %p1403_p13 = scmp.lt.u32.totalorder %s1399_s29, %s1898_s6 }
  0x5a   :  { %p1405_p0 = pnand %p1403_p13, %p1400_p12 }
  0x5c   :  { %1408 = shalt.err (!%p1405_p0)
}
  0x5d   :  { %s1409_s15 = scalar_lea.vmem %s1636_s16, 256  ;;  %p1414_p2 = scmp.lt.s32.totalorder %s1636_s16, %s1636_s16 }
  0x5e   :  { %p1410_p1 = scmp.ne.s32.totalorder %s1636_s16, %s1409_s15  ;;  %p1415_p3 = scmp.lt.s32.totalorder %s1409_s15, %s1409_s15 }
  0x60   :  { %p1416_p4 = por %p1415_p3, %p1414_p2 }
  0x62   :  { %p1417_p5 = pnand %p1416_p4, %p1410_p1 }
  0x64   :  { %1420 = shalt.err (!%p1417_p5)
}
  0x65   :  { %82 = dma.hbm_to_vmem [thread:$0]  %s1898_s6, 256, %s1636_s16, [#allocation9], %s1479_s2, %s1479_s2, %s1480_s18  }
  0x66   :  { %s1485_s17 = smov [#allocation13]   ;;  %s1421_s20 = scalar_lea.hbm %s1901_s9, 1280 }
  0x67   :  { %s102_s4 = sshll.u32 %s1485_s17, 4  ;;  %p1422_p6 = scmp.ne.s32.totalorder %s1901_s9, %s1421_s20  ;;  %s103_s4 = int_to_ptr.vmem [resolvable:$true] %s102_s4 }
  0x68   :  { %p1425_p7 = scmp.lt.u32.totalorder %s1421_s20, %s1901_s9 }
  0x6a   :  { %p1427_p8 = pnand %p1425_p7, %p1422_p6 }
  0x6c   :  { %1430 = shalt.err (!%p1427_p8)
}
  0x6d   :  { %s1431_s22 = scalar_lea.vmem %s103_s4, 1280  ;;  %p1436_p10 = scmp.lt.s32.totalorder %s103_s4, %s103_s4 }
  0x6e   :  { %p1432_p9 = scmp.ne.s32.totalorder %s103_s4, %s1431_s22  ;;  %p1437_p11 = scmp.lt.s32.totalorder %s1431_s22, %s1431_s22 }
  0x70   :  { %p1438_p12 = por %p1437_p11, %p1436_p10 }
  0x72   :  { %p1439_p13 = pnand %p1438_p12, %p1432_p9 }
  0x74   :  { %1442 = shalt.err (!%p1439_p13)
}
  0x75   :  { %108 = dma.hbm_to_vmem [thread:$0]  %s1901_s9, 1280, %s103_s4, [#allocation12], %s1476_s26, %s1476_s26, %s1477_s27  }
  0x76   :  { %1465 = dma.done.wait [#allocation3], 128  }
  0x77   :  { %1466 = vsyncadd [#allocation3], 4294967168 }
  0x78   :  { %1467 = dma.done.wait [#allocation6], 8704  }
  0x79   :  { %1468 = vsyncadd [#allocation6], 4294958592 }
  0x7a   :  { %1469 = dma.done.wait [#allocation9], 512  }
  0x7b   :  { %1470 = vsyncadd [#allocation9], 4294966784 }
  0x7c   :  { %1471 = dma.done.wait [#allocation12], 1536  }
  0x7d   :  { %1472 = vsyncadd [#allocation12], 4294965760  ;;  %v371_v0 = vld [vmem:[#allocation7 + $0x8] sm:$0xff]  ;;  %v373_v1 = vld [vmem:[#allocation7 + $0x18] sm:$0xff]  ;;  %vm1487_vm0 = vmmov 0   ;;  %vm512_vm1 = vcmask 64512  }
  0x7e   :  { %v370_v2 = vld [vmem:[#allocation7] sm:$0xff]  ;;  %v1133_v3 = vpack.c.bf16 %v373_v1, %v371_v0  ;;  %v372_v4 = vld [vmem:[#allocation7 + $0x10] sm:$0xff]  ;;  %v375_v5 = vld [vmem:[#allocation7 + $0x28] sm:$0xff]  ;;  %vm597_vm2 = vcmask 1040384   ;;  %vm1490_vm3 = vmmov 1   ;;  %vm593_vm5 = vcmask 72704  }
  0x7f   :  { %v377_v6 = vld [vmem:[#allocation7 + $0x38] sm:$0xff]  ;;  %v1135_v7 = vpack.c.bf16 %v372_v4, %v370_v2  ;;  %v374_v9 = vld [vmem:[#allocation7 + $0x20] sm:$0xff]  ;;  %v376_v10 = vld [vmem:[#allocation7 + $0x30] sm:$0xff]  ;;  %vm813_vm6 = vcmask 1043456   ;;  %vm809_vm7 = vcmask 293888   ;;  %s1500_s7 = smov 112  }
  0x80   :  { %v1137_v8 = vpack.c.bf16 %v377_v6, %v375_v5  ;;  %v379_v11 = vld [vmem:[#allocation7 + $0x48] sm:$0xff]  ;;  %1134 = vmatprep.subr.bf16.mxu0 %v1133_v3  ;;  %v381_v12 = vld [vmem:[#allocation7 + $0x58] sm:$0xff]  ;;  %v1139_v13 = vpack.c.bf16 %v376_v10, %v374_v9  ;;  %v378_v15 = vld [vmem:[#allocation7 + $0x40] sm:$0xff]  ;;  %s1501_s24 = smov 80   ;;  %s1502_s13 = smov 48   ;;  %vm985_vm8 = vcmask 130048  }
  0x81   :  { %1136 = vmatpush1.bf16.msra.mxu0 %v1135_v7  ;;  %v1141_v14 = vpack.c.bf16 %v381_v12, %v379_v11  ;;  %v380_v16 = vld [vmem:[#allocation7 + $0x50] sm:$0xff]  ;;  %v383_v17 = vld [vmem:[#allocation7 + $0x68] sm:$0xff]  ;;  %v385_v18 = vld [vmem:[#allocation7 + $0x78] sm:$0xff]  ;;  %s1503_s15 = smov 64   ;;  %s1504_s3 = smov 32  }
  0x82   :  { %1138 = vmatprep.subr.bf16.mxu0 %v1137_v8  ;;  %v1143_v19 = vpack.c.bf16 %v380_v16, %v378_v15  ;;  %v1145_v20 = vpack.c.bf16 %v385_v18, %v383_v17  ;;  %v382_v21 = vld [vmem:[#allocation7 + $0x60] sm:$0xff]  ;;  %v384_v22 = vld [vmem:[#allocation7 + $0x70] sm:$0xff]  ;;  %v387_v23 = vld [vmem:[#allocation7 + $0x88] sm:$0xff]  ;;  %s1505_s14 = smov 126   ;;  %s1506_s17 = smov 127  }
  0x83   :  { %v389_v24 = vld [vmem:[#allocation7 + $0x98] sm:$0xff]  ;;  %v1147_v25 = vpack.c.bf16 %v384_v22, %v382_v21  ;;  %v386_v27 = vld [vmem:[#allocation7 + $0x80] sm:$0xff]  ;;  %v388_v28 = vld [vmem:[#allocation7 + $0x90] sm:$0xff]  ;;  %s1507_s4 = smov 124   ;;  %s1508_s12 = smov 125  }
  0x84   :  { %v1149_v26 = vpack.c.bf16 %v389_v24, %v387_v23  ;;  %v391_v29 = vld [vmem:[#allocation7 + $0xa8] sm:$0xff]  ;;  %v393_v30 = vld [vmem:[#allocation7 + $0xb8] sm:$0xff]  ;;  %v1151_v31 = vpack.c.bf16 %v388_v28, %v386_v27  ;;  %v390_v33 = vld [vmem:[#allocation7 + $0xa0] sm:$0xff]  ;;  %s1509_s19 = smov 122   ;;  %s1510_s20 = smov 123  }
  0x85   :  { %1140 = vmatpush1.bf16.msra.mxu0 %v1139_v13  ;;  %v1153_v32 = vpack.c.bf16 %v393_v30, %v391_v29  ;;  %v392_v34 = vld [vmem:[#allocation7 + $0xb0] sm:$0xff]  ;;  %v395_v35 = vld [vmem:[#allocation7 + $0xc8] sm:$0xff]  ;;  %v397_v36 = vld [vmem:[#allocation7 + $0xd8] sm:$0xff]  ;;  %s1511_s22 = smov 120   ;;  %s1512_s6 = smov 121  }
  0x86   :  { %1142 = vmatprep.subr.bf16.mxu0 %v1141_v14  ;;  %v1155_v37 = vpack.c.bf16 %v392_v34, %v390_v33  ;;  %v1157_v38 = vpack.c.bf16 %v397_v36, %v395_v35  ;;  %v394_v39 = vld [vmem:[#allocation7 + $0xc0] sm:$0xff]  ;;  %v396_v40 = vld [vmem:[#allocation7 + $0xd0] sm:$0xff]  ;;  %v399_v42 = vld [vmem:[#allocation7 + $0xe8] sm:$0xff]  ;;  %v1486_v34 = vmov 0.0   ;;  %v1488_v36 = vmov 0   ;;  %s1513_s23 = smov 17  }
  0x87   :  { %v1691_v41 = vld [vmem:[%s1892_s0 + $0x8] sm:$0xff]  ;;  %v401_v43 = vld [vmem:[#allocation7 + $0xf8] sm:$0xff]  ;;  %v1159_v44 = vpack.c.bf16 %v396_v40, %v394_v39  ;;  %v400_v47 = vld [vmem:[#allocation7 + $0xf0] sm:$0xff]  ;;  %1116 = vmatprep.subr.mxu1 %v1486_v34  ;;  %1118 = vmatprep.mubr.msk.f32.mxu1 %vm1487_vm0, %v1486_v34  ;;  %s1515_s25 = smov 1   ;;  %s1516_s29 = smov 113  }
  0x88   :  { %498 = vmatprep.mubr.f32.mxu0 %v1691_v41  ;;  %v1161_v45 = vpack.c.bf16 %v401_v43, %v399_v42  ;;  %v398_v46 = vld [vmem:[#allocation7 + $0xe0] sm:$0xff]  ;;  %v403_v48 = vld [vmem:[#allocation7 + $0x108] sm:$0xff]  ;;  %v405_v49 = vld [vmem:[#allocation7 + $0x118] sm:$0xff]  ;;  %1257 = vset.pattern.permute.xlu0 %v1488_v36  ;;  %s1517_s30 = smov 111  }
  0x89   :  { %1144 = vmatpush1.bf16.msra.mxu0 %v1143_v19  ;;  %v1163_v50 = vpack.c.bf16 %v400_v47, %v398_v46  ;;  %v1165_v51 = vpack.c.bf16 %v405_v49, %v403_v48  ;;  %v402_v52 = vld [vmem:[#allocation7 + $0x100] sm:$0xff]  ;;  %v404_v53 = vld [vmem:[#allocation7 + $0x110] sm:$0xff]  ;;  %v407_v54 = vld [vmem:[#allocation7 + $0x128] sm:$0xff] }
  0x8a   :  { %1146 = vmatprep.subr.bf16.mxu0 %v1145_v20  ;;  %v409_v55 = vld [vmem:[#allocation7 + $0x138] sm:$0xff]  ;;  %v1167_v56 = vpack.c.bf16 %v404_v53, %v402_v52  ;;  %v406_v58 = vld [vmem:[#allocation7 + $0x120] sm:$0xff]  ;;  %v408_v59 = vld [vmem:[#allocation7 + $0x130] sm:$0xff] }
  0x8b   :  { %v1169_v57 = vpack.c.bf16 %v409_v55, %v407_v54  ;;  %v411_v60 = vld [vmem:[#allocation7 + $0x148] sm:$0xff]  ;;  %v413_v61 = vld [vmem:[#allocation7 + $0x158] sm:$0xff]  ;;  %v1171_v62 = vpack.c.bf16 %v408_v59, %v406_v58  ;;  %v410_v0 = vld [vmem:[#allocation7 + $0x140] sm:$0xff] }
  0x8c   :  { %v1173_v63 = vpack.c.bf16 %v413_v61, %v411_v60  ;;  %v412_v1 = vld [vmem:[#allocation7 + $0x150] sm:$0xff]  ;;  %v415_v2 = vld [vmem:[#allocation7 + $0x168] sm:$0xff]  ;;  %v417_v3 = vld [vmem:[#allocation7 + $0x178] sm:$0xff] }
  0x8d   :  { %1148 = vmatpush1.bf16.msra.mxu0 %v1147_v25  ;;  %v1175_v4 = vpack.c.bf16 %v412_v1, %v410_v0  ;;  %v1177_v5 = vpack.c.bf16 %v417_v3, %v415_v2  ;;  %v414_v6 = vld [vmem:[#allocation7 + $0x160] sm:$0xff]  ;;  %v416_v7 = vld [vmem:[#allocation7 + $0x170] sm:$0xff]  ;;  %v419_v8 = vld [vmem:[#allocation7 + $0x188] sm:$0xff] }
  0x8e   :  { %1150 = vmatprep.subr.bf16.mxu0 %v1149_v26  ;;  %v421_v9 = vld [vmem:[#allocation7 + $0x198] sm:$0xff]  ;;  %v1179_v10 = vpack.c.bf16 %v416_v7, %v414_v6  ;;  %v418_v12 = vld [vmem:[#allocation7 + $0x180] sm:$0xff]  ;;  %v420_v13 = vld [vmem:[#allocation7 + $0x190] sm:$0xff]  ;;  %v1491_v7 = vmov 1  }
  0x8f   :  { %v1181_v11 = vpack.c.bf16 %v421_v9, %v419_v8  ;;  %v423_v14 = vld [vmem:[#allocation7 + $0x1a8] sm:$0xff]  ;;  %v425_v15 = vld [vmem:[#allocation7 + $0x1b8] sm:$0xff]  ;;  %v1183_v16 = vpack.c.bf16 %v420_v13, %v418_v12  ;;  %v422_v18 = vld [vmem:[#allocation7 + $0x1a0] sm:$0xff]  ;;  %1258 = vset.pattern.permute.xlu1 %v1491_v7  ;;  %v1492_v8 = vmov 3   ;;  %v1493_v9 = vmov 2  }
  0x90   :  { %v1185_v17 = vpack.c.bf16 %v425_v15, %v423_v14  ;;  %v424_v19 = vld [vmem:[#allocation7 + $0x1b0] sm:$0xff]  ;;  %v427_v20 = vld [vmem:[#allocation7 + $0x1c8] sm:$0xff]  ;;  %v429_v21 = vld [vmem:[#allocation7 + $0x1d8] sm:$0xff]  ;;  %v1496_v12 = vmov 5   ;;  %v1497_v13 = vmov 7  }
  0x91   :  { %1152 = vmatpush1.bf16.msra.mxu0 %v1151_v31  ;;  %v1187_v22 = vpack.c.bf16 %v424_v19, %v422_v18  ;;  %v1189_v23 = vpack.c.bf16 %v429_v21, %v427_v20  ;;  %v426_v24 = vld [vmem:[#allocation7 + $0x1c0] sm:$0xff]  ;;  %v428_v25 = vld [vmem:[#allocation7 + $0x1d0] sm:$0xff]  ;;  %v431_v26 = vld [vmem:[#allocation7 + $0x1e8] sm:$0xff] }
  0x92   :  { %1154 = vmatprep.subr.bf16.mxu0 %v1153_v32  ;;  %v433_v27 = vld [vmem:[#allocation7 + $0x1f8] sm:$0xff]  ;;  %v1191_v28 = vpack.c.bf16 %v428_v25, %v426_v24  ;;  %v430_v30 = vld [vmem:[#allocation7 + $0x1e0] sm:$0xff]  ;;  %v432_v31 = vld [vmem:[#allocation7 + $0x1f0] sm:$0xff]  ;;  %v1498_v25 = vmov 8  }
  0x93   :  { %v1193_v29 = vpack.c.bf16 %v433_v27, %v431_v26  ;;  %v1195_v32 = vpack.c.bf16 %v432_v31, %v430_v30  ;;  %v1697_v33 = vld [vmem:[%s1892_s0] sm:$0xff]  ;;  %v591_v42 = vld [vmem:[#allocation11] sm:$0xff]  ;;  %v592_v43 = vld [vmem:[#allocation11 + $0x8] sm:$0x1]  ;;  %s1518_s0 = smov [#allocation14]  }
  0x94   :  { %v506_v35 = vld [vmem:[%s1897_s5] sm:$0xff]  ;;  %vm1199_vm4 = vmpackc.low %vm597_vm2, %vm1490_vm3  ;;  %v713_v55 = vld [vmem:[#allocation8 + $0x8] sm:$0xff] }
  0x95   :  { %1156 = vmatpush1.bf16.msra.mxu0 %v1155_v37  ;;  %509 = vperm.xlu0 %1257, %v506_v35   ;;  %v1103_v37 = vld [vmem:[%s1897_s5 + $0x8] sm:$0xff]  ;;  %v799_v59 = vld [vmem:[#allocation13] sm:$0xff]  ;;  %v892_v6 = vld [vmem:[#allocation10 + $0x8] sm:$0xff]  ;;  %s1499_s5 = smov 96  }
  0x96   :  { %1158 = vmatprep.subr.bf16.mxu0 %v1157_v38  ;;  %v505_v38 = vld [vmem:[#allocation8] sm:$0xff]  ;;  %v803_v1 = vld [vmem:[#allocation13 + $0x20] sm:$0xff]  ;;  %901 = vperm.xlu1 %1258, %v892_v6  }
  0x97   :  { %v801_v60 = vld [vmem:[#allocation13 + $0x10] sm:$0xff] }
  0x98   :  { %v1203_v61 = vpack.c.bf16 %v801_v60, %v799_v59  ;;  %v805_v2 = vld [vmem:[#allocation13 + $0x30] sm:$0xff] }
  0x99   :  { %1160 = vmatpush1.bf16.msra.mxu0 %v1159_v44  ;;  %718 = vperm.xlu0 %1257, %v1103_v37   ;;  %v1198_v44 = vpack.c.bf16 %v592_v43, %v591_v42  ;;  %v1207_v3 = vpack.c.bf16 %v805_v2, %v803_v1 }
  0x9a   :  { %1162 = vmatprep.subr.bf16.mxu0 %v1161_v45  ;;  %v1489_v45 = vmov 0.0|0.0   ;;  %1259 = vset.pattern.permute.xlu1 %v1493_v9 }
  0x9b   :  { %911 = vperm.xlu1 %1259, %v892_v6  }
  0x9d   :  { %1164 = vmatpush1.bf16.msra.mxu0 %v1163_v50  ;;  %1260 = vset.pattern.permute.xlu0 %v1492_v8 }
  0x9e   :  { %1166 = vmatprep.subr.bf16.mxu0 %v1165_v51  ;;  %921 = vperm.xlu0 %1260, %v892_v6  }
  0xa1   :  { %1168 = vmatpush1.bf16.msra.mxu0 %v1167_v56  ;;  %v800_v56 = vld [vmem:[#allocation13 + $0x8] sm:$0xff] }
  0xa2   :  { %1170 = vmatprep.subr.bf16.mxu0 %v1169_v57  ;;  %v802_v57 = vld [vmem:[#allocation13 + $0x18] sm:$0xff] }
  0xa3   :  { %v1201_v58 = vpack.c.bf16 %v802_v57, %v800_v56 }
  0xa5   :  { %1172 = vmatpush1.bf16.msra.mxu0 %v1171_v62  ;;  %v804_v62 = vld [vmem:[#allocation13 + $0x28] sm:$0xff] }
  0xa6   :  { %1174 = vmatprep.subr.bf16.mxu0 %v1173_v63  ;;  %v806_v63 = vld [vmem:[#allocation13 + $0x38] sm:$0xff] }
  0xa7   :  { %v1205_v0 = vpack.c.bf16 %v806_v63, %v804_v62 }
  0xa9   :  { %1176 = vmatpush1.bf16.msra.mxu0 %v1175_v4  ;;  %v808_v4 = vld [vmem:[#allocation13 + $0x48] sm:$0xf] }
  0xaa   :  { %1178 = vmatprep.subr.bf16.mxu0 %v1177_v5  ;;  %v807_v5 = vld [vmem:[#allocation13 + $0x40] sm:$0xf] }
  0xad   :  { %1180 = vmatpush1.bf16.msra.mxu0 %v1179_v10  ;;  %v1494_v10 = vmov 6  }
  0xae   :  { %1182 = vmatprep.subr.bf16.mxu0 %v1181_v11  ;;  %1263 = vset.pattern.permute.xlu0 %v1494_v10  ;;  %v1495_v11 = vmov 4  }
  0xaf   :  { %951 = vperm.xlu0 %1263, %v892_v6   ;;  %1261 = vset.pattern.permute.xlu1 %v1495_v11 }
  0xb0   :  { %931 = vperm.xlu1 %1261, %v892_v6  }
  0xb1   :  { %1184 = vmatpush1.bf16.msra.mxu0 %v1183_v16 }
  0xb2   :  { %1186 = vmatprep.subr.bf16.mxu0 %v1185_v17 }
  0xb3   :  { %1267 = vset.pattern.permute.xlu0 %v1488_v36 }
  0xb4   :  { %1262 = vset.pattern.permute.xlu1 %v1496_v12 }
  0xb5   :  { %1188 = vmatpush1.bf16.msra.mxu0 %v1187_v22  ;;  %941 = vperm.xlu1 %1262, %v892_v6  }
  0xb6   :  { %1190 = vmatprep.subr.bf16.mxu0 %v1189_v23 }
  0xb9   :  { %1192 = vmatpush1.bf16.msra.mxu0 %v1191_v28  ;;  %1264 = vset.pattern.permute.xlu1 %v1497_v13 }
  0xba   :  { %1194 = vmatprep.subr.bf16.mxu0 %v1193_v29  ;;  %961 = vperm.xlu1 %1264, %v892_v6  }
  0xbd   :  { %1196 = vmatpush1.bf16.msra.mxu0 %v1195_v32 }
  0xbe   :  { %1265 = vset.pattern.permute.xlu1 %v1488_v36 }
  0xbf   :  { %895 = vperm.xlu1 %1265, %v892_v6  }
  0xc0   :  { %499 = vmatmul.mubr.f32.vlgmr.msra.gmra.mrb[0].mxu0 %v1697_v33 }
  0xc3   :  { %1266 = vset.pattern.permute.xlu1 %v1498_v25 }
 0x114   :  { %v510_v46 = vpop.permute.xlu0 %509 }
 0x115   :  { %v902_v26 = vpop.permute.xlu1 %901 }
 0x118   :  { %v719_v16 = vpop.permute.xlu0 %718 }
 0x11a   :  { %v912_v27 = vpop.permute.xlu1 %911 }
 0x12f   :  { %v932_v28 = vpop.permute.xlu1 %931 }
 0x134   :  { %v942_v37 = vpop.permute.xlu1 %941 }
 0x139   :  { %v962_v42 = vpop.permute.xlu1 %961 }
 0x13e   :  { %v896_v56 = vpop.permute.xlu1 %895 }
 0x193   :  { %v500_v39 = vpop.f32.mrb[0].mxu0 }
 0x194   :  { %v502_v40 = vpop.f32.mrb[1].mxu0  ;;  %1117 = vmatpush3.msra.mxu1 %v500_v39 }
 0x195   :  { %1119 = vmatmul.mubr.msk.f32.vlgmr.msra.gmra.mrb[0].mxu1 %vm512_vm1, %v505_v38  ;;  %1197 = vmatprep.subr.bf16.mxu1 %v1489_v45  ;;  %v671_v45 = vld [vmem:[#allocation10] sm:$0xff] }
 0x196   :  { %1125 = vmatprep.mubr.msk.f32.mxu1 %vm1487_vm0, %v1486_v34  ;;  %1200 = vmatpush3.bf16.msk.msra.mxu1 %vm1199_vm4, %v1198_v44 }
 0x197   :  { %1128 = vmatprep.subr.mxu1 %v1486_v34 }
 0x268   :  { %v582_v47 = vpop.f32.mrb[0].mxu1 }
 0x269   :  { %v583_v48 = vadd.f32 %v582_v47, %v510_v46  ;;  %v1120_v49 = vpop.f32.mrb[1].mxu1  ;;  %v982_v47 = vld [vmem:[%s1902_s10 + $0x8] sm:$0xff] }
 0x26b   :  { %v587_v50 = vmul.f32 0.70710677, %v583_v48  ;;  %v586_v52 = vmul.f32 0.5, %v583_v48  ;;  %v984_v48 = vld [vmem:[%s1902_s10 + $0x18] sm:$0xff] }
 0x26c   :  { %v1209_v49 = vpack.c.bf16 %v984_v48, %v982_v47  ;;  %v143_v48 = vlaneseq }
 0x26d   :  { %1277 = verf.f32 %v587_v50  ;;  %v981_v50 = vld [vmem:[%s1902_s10] sm:$0xff] }
 0x277   :  { %v1278_v51 = vpop.eup %1277 }
 0x278   :  { %v589_v53 = vadd.f32 1.0, %v1278_v51  ;;  %v983_v51 = vld [vmem:[%s1902_s10 + $0x10] sm:$0xff]  ;;  %s1514_s10 = smov 15  }
 0x27a   :  { %v590_v54 = vmul.f32 %v589_v53, %v586_v52  ;;  %v134_v52 = vld [vmem:[#allocation2] sm:$0xff]  ;;  %v1211_v53 = vpack.c.bf16 %v983_v51, %v981_v50  ;;  %v1807_v51 = vshrl.u32 %v143_v48, 7 }
 0x27c   :  { %1126 = vmatmul.mubr.msk.f32.vlgmr.msra.gmra.mrb[2].mxu1 %vm593_vm5, %v590_v54 }
 0x27d   :  { %1129 = vmatpush3.msra.mxu1 %v502_v40  ;;  %1130 = vmatprep.mubr.msk.f32.mxu1 %vm1487_vm0, %v1486_v34 }
 0x27e   :  { %1202 = vmatprep.subr.bf16.mxu1 %v1201_v58 }
 0x280   :  { %1131 = vmatmul.mubr.msk.f32.vlgmr.msra.gmra.mrb[4].mxu1 %vm512_vm1, %v713_v55 }
 0x281   :  { %884 = vmatprep.mubr.f32.mxu1 %v1486_v34  ;;  %1204 = vmatpush1.bf16.msra.mxu1 %v1203_v61 }
 0x282   :  { %1206 = vmatprep.subr.bf16.mxu1 %v1205_v0 }
 0x285   :  { %1208 = vmatpush1.bf16.msra.mxu1 %v1207_v3 }
 0x286   :  { %1105 = vmatprep.subr.msk.mxu1 %vm813_vm6, %v808_v4 }
 0x289   :  { %1106 = vmatpush1.msk.msra.mxu1 %vm813_vm6, %v807_v5 }
 0x28a   :  { %1210 = vmatprep.subr.bf16.mxu1 %v1209_v49 }
 0x34f   :  { %v667_v14 = vpop.f32.mrb[2].mxu1 }
 0x350   :  { %v1127_v15 = vpop.f32.mrb[3].mxu1  ;;  %v1745_v46 = vmul.f32 %v671_v45, %v667_v14 }
 0x353   :  { %v790_v17 = vpop.f32.mrb[4].mxu1 }
 0x354   :  { %v791_v18 = vadd.f32 %v790_v17, %v719_v16  ;;  %v1132_v19 = vpop.f32.mrb[5].mxu1 }
 0x356   :  { %v795_v20 = vmul.f32 0.70710677, %v791_v18  ;;  %v794_v22 = vmul.f32 0.5, %v791_v18 }
 0x358   :  { %1279 = verf.f32 %v795_v20 }
 0x362   :  { %v1280_v21 = vpop.eup %1279 }
 0x363   :  { %v797_v23 = vadd.f32 1.0, %v1280_v21 }
 0x365   :  { %v798_v24 = vmul.f32 %v797_v23, %v794_v22 }
 0x367   :  { %1107 = vmatmul.mubr.msk.f32.vlgmr.msra.gmra.mrb[6].mxu1 %vm809_vm7, %v798_v24 }
 0x368   :  { %1053 = vmatprep.mubr.f32.mxu1 %v1486_v34  ;;  %v922_v34 = vpop.permute.xlu0 %921  ;;  %1212 = vmatpush1.bf16.msra.mxu1 %v1211_v53  ;;  %v150_v53 = vsub.s32 0, %v1807_v51 }
 0x36c   :  { %v952_v40 = vpop.permute.xlu0 %951 }
 0x43a   :  { %v1731_v29 = vpop.f32.mrb[6].mxu1 }
 0x43b   :  { %v1733_v30 = vpop.f32.mrb[7].mxu1  ;;  %v914_v31 = vmul.f32 %v912_v27, %v1731_v29  ;;  %v904_v32 = vmul.f32 %v902_v26, %v1731_v29  ;;  %v924_v35 = vmul.f32 %v922_v34, %v1731_v29  ;;  %v944_v38 = vmul.f32 %v942_v37, %v1731_v29 }
 0x43c   :  { %v934_v39 = vmul.f32 %v932_v28, %v1731_v29  ;;  %v964_v43 = vmul.f32 %v962_v42, %v1731_v29  ;;  %v954_v44 = vmul.f32 %v952_v40, %v1731_v29  ;;  %v898_v57 = vmul.f32 %v896_v56, %v1731_v29 }
 0x43d   :  { %916 = vrot.lane.b32.xlu1 %v914_v31, %s1499_s5  ;;  %906 = vrot.lane.b32.xlu0 %v904_v32, %s1500_s7  ;;  %s1083_s5 = sshll.u32 %s1518_s0, 4  ;;  %s1084_s5 = int_to_ptr.vmem [resolvable:$true] %s1083_s5 }
 0x43e   :  { %p1448_p1 = scmp.lt.s32.totalorder %s1084_s5, %s1084_s5 }
 0x441   :  { %971 = vperm.xlu1 %1266, %v892_v6   ;;  %926 = vrot.lane.b32.xlu0 %v924_v35, %s1501_s24 }
 0x445   :  { %946 = vrot.lane.b32.xlu1 %v944_v38, %s1502_s13  ;;  %936 = vrot.lane.b32.xlu0 %v934_v39, %s1503_s15 }
 0x446   :  { %1268 = vset.pattern.permute.xlu1 %v1491_v7 }
 0x449   :  { %966 = vrot.lane.b32.xlu1 %v964_v43, %s1477_s27  ;;  %956 = vrot.lane.b32.xlu0 %v954_v44, %s1504_s3 }
 0x44d   :  { %679 = vrot.lane.b32.xlu1 %v1745_v46, %s1505_s14  ;;  %675 = vrot.lane.b32.xlu0 %v1745_v46, %s1506_s17 }
 0x451   :  { %687 = vrot.lane.b32.xlu1 %v1745_v46, %s1507_s4  ;;  %683 = vrot.lane.b32.xlu0 %v1745_v46, %s1508_s12 }
 0x455   :  { %695 = vrot.lane.b32.xlu1 %v1745_v46, %s1509_s19  ;;  %691 = vrot.lane.b32.xlu0 %v1745_v46, %s1510_s20 }
 0x459   :  { %703 = vrot.lane.b32.xlu1 %v1745_v46, %s1511_s22  ;;  %699 = vrot.lane.b32.xlu0 %v1745_v46, %s1512_s6 }
 0x45d   :  { %185 = vperm.xlu1 %1268, %v134_v52   ;;  %160 = vperm.xlu0 %1267, %v134_v52  }
 0x461   :  { %1269 = vset.pattern.permute.xlu1 %v1493_v9  ;;  %139 = vrot.lane.b32.xlu0 %v1697_v33, %s1513_s23 }
 0x462   :  { %210 = vperm.xlu1 %1269, %v134_v52   ;;  %1270 = vset.pattern.permute.xlu0 %v1492_v8 }
 0x465   :  { %167 = vrot.lane.b32.xlu0 %v1697_v33, %s1477_s27 }
 0x466   :  { %141 = vrot.lane.b32.xlu1 %v1691_v41, %s1513_s23 }
 0x467   :  { %1273 = vset.pattern.permute.xlu1 %v1494_v10 }
 0x469   :  { %235 = vperm.xlu0 %1270, %v134_v52  }
 0x46a   :  { %169 = vrot.lane.b32.xlu1 %v1691_v41, %s1477_s27 }
 0x46d   :  { %1271 = vset.pattern.permute.xlu0 %v1495_v11 }
 0x46e   :  { %192 = vrot.lane.b32.xlu1 %v1697_v33, %s1514_s10  ;;  %253 = vperm.xlu0 %1271, %v134_v52  }
 0x472   :  { %194 = vrot.lane.b32.xlu1 %v1691_v41, %s1514_s10  ;;  %1272 = vset.pattern.permute.xlu0 %v1496_v12 }
 0x473   :  { %278 = vperm.xlu0 %1272, %v134_v52  }
 0x476   :  { %217 = vrot.lane.b32.xlu1 %v1697_v33, %s1515_s25 }
 0x477   :  { %262 = vrot.lane.b32.xlu0 %v1691_v41, %s1506_s17 }
 0x478   :  { %1275 = vset.pattern.permute.xlu0 %v1498_v25 }
 0x47a   :  { %219 = vrot.lane.b32.xlu1 %v1691_v41, %s1515_s25 }
 0x47b   :  { %285 = vrot.lane.b32.xlu0 %v1697_v33, %s1516_s29 }
 0x47e   :  { %303 = vperm.xlu1 %1273, %v134_v52  }
 0x47f   :  { %353 = vperm.xlu0 %1275, %v134_v52  }
 0x482   :  { %260 = vrot.lane.b32.xlu1 %v1697_v33, %s1506_s17 }
 0x483   :  { %1274 = vset.pattern.permute.xlu1 %v1497_v13  ;;  %335 = vrot.lane.b32.xlu0 %v1697_v33, %s1517_s30 }
 0x484   :  { %1276 = vset.pattern.permute.xlu0 %v1488_v36 }
 0x486   :  { %328 = vperm.xlu1 %1274, %v134_v52   ;;  %v1809_v52 = vand.u32 127, %v143_v48 }
 0x488   :  { %vm145_vm9 = vcmp.lt.s32.totalorder %v1809_v52, 17  ;;  %vm171_vm10 = vcmp.lt.s32.totalorder %v1809_v52, 16  ;;  %vm196_vm11 = vcmp.lt.s32.totalorder %v1809_v52, 15  ;;  %vm221_vm12 = vcmp.lt.s32.totalorder %v1809_v52, 1 }
 0x489   :  { %vm264_vm13 = vcmp.lt.s32.totalorder %v1809_v52, 127  ;;  %vm289_vm14 = vcmp.lt.s32.totalorder %v1809_v52, 113  ;;  %vm314_vm15 = vcmp.lt.s32.totalorder %v1809_v52, 112  ;;  %vm339_vm0 = vcmp.lt.s32.totalorder %v1809_v52, 111 }
 0x48a   :  { %287 = vrot.lane.b32.xlu1 %v1691_v41, %s1516_s29 }
 0x48e   :  { %310 = vrot.lane.b32.xlu1 %v1697_v33, %s1500_s7 }
 0x492   :  { %312 = vrot.lane.b32.xlu1 %v1691_v41, %s1500_s7  ;;  %s1443_s7 = scalar_lea.vmem %s1084_s5, 768 }
 0x493   :  { %p1444_p0 = scmp.ne.s32.totalorder %s1084_s5, %s1443_s7  ;;  %p1449_p2 = scmp.lt.s32.totalorder %s1443_s7, %s1443_s7 }
 0x495   :  { %p1450_p3 = por %p1449_p2, %p1448_p1 }
 0x496   :  { %337 = vrot.lane.b32.xlu1 %v1691_v41, %s1517_s30 }
 0x497   :  { %p1451_p4 = pnand %p1450_p3, %p1444_p0 }
 0x4af   :  { %v907_v54 = vpop.permute.xlu0 %906  ;;  %v917_v60 = vpop.permute.xlu1 %916 }
 0x4b0   :  { %v909_v59 = vadd.f32 %v907_v54, %v898_v57  ;;  %v176_v54 = vsub.s32 1, %v1807_v51  ;;  %v1817_v57 = vld [vmem:[#allocation5] sm:$0xff] }
 0x4b2   :  { %v919_v36 = vadd.f32 %v917_v60, %v909_v59  ;;  %v201_v59 = vsub.s32 2, %v1807_v51  ;;  %v151_v60 = vrot.slane %v1817_v57, %v150_v53 }
 0x4b3   :  { %v927_v55 = vpop.permute.xlu0 %926 }
 0x4b4   :  { %v929_v63 = vadd.f32 %v927_v55, %v919_v36  ;;  %v177_v36 = vrot.slane %v1817_v57, %v176_v54 }
 0x4b7   :  { %v937_v58 = vpop.permute.xlu0 %936 }
 0x4b8   :  { %v939_v0 = vadd.f32 %v937_v58, %v929_v63  ;;  %v1819_v58 = vld [vmem:[#allocation5 + $0x8] sm:$0xff] }
 0x4b9   :  { %v181_v63 = vrot.slane %v1819_v58, %v176_v54 }
 0x4bb   :  { %v957_v61 = vpop.permute.xlu0 %956 }
 0x4bf   :  { %v676_v1 = vpop.permute.xlu0 %675 }
 0x4c0   :  { %v972_v62 = vpop.permute.xlu1 %971  ;;  %v678_v9 = vadd.f32 %v676_v1, %v1745_v46 }
 0x4c1   :  { %v974_v6 = vmul.f32 %v972_v62, %v1733_v30 }
 0x4c3   :  { %v684_v8 = vpop.permute.xlu0 %683 }
 0x4c4   :  { %v947_v2 = vpop.permute.xlu1 %946 }
 0x4c5   :  { %v949_v3 = vadd.f32 %v947_v2, %v939_v0 }
 0x4c7   :  { %v959_v4 = vadd.f32 %v957_v61, %v949_v3  ;;  %v692_v15 = vpop.permute.xlu0 %691  ;;  %v155_v61 = vrot.slane %v1819_v58, %v150_v53 }
 0x4c8   :  { %v967_v5 = vpop.permute.xlu1 %966 }
 0x4c9   :  { %v969_v7 = vadd.f32 %v967_v5, %v959_v4  ;;  %v226_v5 = vsub.s32 3, %v1807_v51 }
 0x4cb   :  { %v975_v10 = vadd.f32 %v974_v6, %v969_v7  ;;  %v700_v21 = vpop.permute.xlu0 %699  ;;  %v202_v6 = vrot.slane %v1817_v57, %v201_v59 }
 0x4cc   :  { %v680_v11 = vpop.permute.xlu1 %679 }
 0x4cd   :  { %v977_v12 = vmul.f32 0.70710677, %v975_v10  ;;  %v682_v13 = vadd.f32 %v680_v11, %v678_v9  ;;  %v976_v26 = vmul.f32 0.5, %v975_v10  ;;  %v206_v9 = vrot.slane %v1819_v58, %v201_v59 }
 0x4cf   :  { %1281 = verf.f32 %v977_v12  ;;  %v686_v14 = vadd.f32 %v684_v8, %v682_v13 }
 0x4d0   :  { %v688_v16 = vpop.permute.xlu1 %687 }
 0x4d1   :  { %v690_v17 = vadd.f32 %v688_v16, %v686_v14  ;;  %v227_v14 = vrot.slane %v1817_v57, %v226_v5 }
 0x4d3   :  { %v694_v18 = vadd.f32 %v692_v15, %v690_v17  ;;  %v244_v15 = vsub.s32 4, %v1807_v51 }
 0x4d4   :  { %v696_v19 = vpop.permute.xlu1 %695 }
 0x4d5   :  { %v698_v20 = vadd.f32 %v696_v19, %v694_v18  ;;  %v231_v18 = vrot.slane %v1819_v58, %v226_v5 }
 0x4d7   :  { %v702_v22 = vadd.f32 %v700_v21, %v698_v20 }
 0x4d8   :  { %v704_v23 = vpop.permute.xlu1 %703 }
 0x4d9   :  { %v1282_v24 = vpop.eup %1281  ;;  %v706_v25 = vadd.f32 %v704_v23, %v702_v22 }
 0x4da   :  { %v979_v27 = vadd.f32 1.0, %v1282_v24 }
 0x4db   :  { %v708_v28 = vmul.f32 0.70710677, %v706_v25  ;;  %v707_v31 = vmul.f32 0.5, %v706_v25 }
 0x4dc   :  { %v980_v29 = vmul.f32 %v979_v27, %v976_v26  ;;  %v186_v35 = vpop.permute.xlu1 %185  ;;  %v161_v43 = vpop.permute.xlu0 %160  ;;  %v245_v27 = vrot.slane %v1817_v57, %v244_v15 }
 0x4dd   :  { %1283 = verf.f32 %v708_v28  ;;  %v249_v28 = vrot.slane %v1819_v58, %v244_v15 }
 0x4de   :  { %1108 = vmatmul.mubr.msk.f32.vlgmr.msra.gmra.mrb[8].mxu1 %vm985_vm8, %v980_v29 }
 0x4e0   :  { %v140_v45 = vpop.permute.xlu0 %139 }
 0x4e1   :  { %v1801_v37 = vpop.permute.xlu1 %210 }
 0x4e4   :  { %v168_v47 = vpop.permute.xlu0 %167 }
 0x4e5   :  { %v142_v38 = vpop.permute.xlu1 %141 }
 0x4e6   :  { %v147_v62 = vsel %vm145_vm9, %v142_v38, %v140_v45  ;;  %v146_v1 = vsel %vm145_vm9, %v140_v45, %v142_v38 }
 0x4e7   :  { %v1284_v30 = vpop.eup %1283  ;;  %v156_v7 = vmul.f32 %v151_v60, %v147_v62  ;;  %v157_v11 = vmul.f32 %v155_v61, %v146_v1  ;;  %v319_v60 = vsub.s32 7, %v1807_v51 }
 0x4e8   :  { %v710_v32 = vadd.f32 1.0, %v1284_v30  ;;  %v1805_v50 = vpop.permute.xlu0 %235 }
 0x4e9   :  { %v170_v39 = vpop.permute.xlu1 %169  ;;  %v163_v17 = vmul.f32 %v161_v43, %v156_v7  ;;  %v164_v23 = vmul.f32 %v161_v43, %v157_v11  ;;  %v294_v43 = vsub.s32 6, %v1807_v51 }
 0x4ea   :  { %v711_v34 = vmul.f32 %v710_v32, %v707_v31  ;;  %v173_v0 = vsel %vm171_vm10, %v170_v39, %v168_v47  ;;  %v172_v2 = vsel %vm171_vm10, %v168_v47, %v170_v39  ;;  %v269_v32 = vsub.s32 5, %v1807_v51 }
 0x4eb   :  { %v182_v8 = vmul.f32 %v177_v36, %v173_v0  ;;  %v183_v12 = vmul.f32 %v181_v63, %v172_v2  ;;  %v299_v62 = vrot.slane %v1819_v58, %v294_v43 }
 0x4ec   :  { %1062 = vperm.xlu0 %1276, %v711_v34   ;;  %v270_v47 = vrot.slane %v1817_v57, %v269_v32  ;;  %v274_v53 = vrot.slane %v1819_v58, %v269_v32 }
 0x4ed   :  { %v193_v40 = vpop.permute.xlu1 %192  ;;  %v1815_v56 = vpop.permute.xlu0 %253  ;;  %v188_v19 = vmul.f32 %v186_v35, %v182_v8  ;;  %v189_v25 = vmul.f32 %v186_v35, %v183_v12  ;;  %v251_v35 = vmul.f32 %v249_v28, %v1691_v41  ;;  %v295_v41 = vrot.slane %v1817_v57, %v294_v43 }
 0x4ef   :  { %v190_v31 = vadd.f32 %v188_v19, %v163_v17  ;;  %v191_v39 = vadd.f32 %v189_v25, %v164_v23  ;;  %v257_v1 = vmul.f32 %v1815_v56, %v251_v35 }
 0x4f1   :  { %v195_v42 = vpop.permute.xlu1 %194 }
 0x4f2   :  { %v1831_v4 = vpop.permute.xlu0 %278  ;;  %v198_v10 = vsel %vm196_vm11, %v195_v42, %v193_v40  ;;  %v197_v13 = vsel %vm196_vm11, %v193_v40, %v195_v42 }
 0x4f3   :  { %v207_v16 = vmul.f32 %v202_v6, %v198_v10  ;;  %v208_v22 = vmul.f32 %v206_v9, %v197_v13  ;;  %v320_v6 = vrot.slane %v1817_v57, %v319_v60  ;;  %v324_v9 = vrot.slane %v1819_v58, %v319_v60 }
 0x4f5   :  { %v218_v44 = vpop.permute.xlu1 %217  ;;  %v213_v29 = vmul.f32 %v1801_v37, %v207_v16  ;;  %v214_v34 = vmul.f32 %v1801_v37, %v208_v22  ;;  %v1099_v22 = vld [vmem:[#allocation5 + $0x18] ss:$0 sm:$0xff] }
 0x4f6   :  { %v263_v21 = vpop.permute.xlu0 %262 }
 0x4f7   :  { %v216_v48 = vadd.f32 %v214_v34, %v191_v39 }
 0x4f9   :  { %v220_v46 = vpop.permute.xlu1 %219 }
 0x4fa   :  { %v223_v24 = vsel %vm221_vm12, %v220_v46, %v218_v44  ;;  %v222_v26 = vsel %vm221_vm12, %v218_v44, %v220_v46  ;;  %v286_v42 = vpop.permute.xlu0 %285  ;;  %v215_v44 = vadd.f32 %v213_v29, %v190_v31  ;;  %v250_v46 = vmul.f32 %v245_v27, %v1697_v33 }
 0x4fb   :  { %v232_v30 = vmul.f32 %v227_v14, %v223_v24  ;;  %v233_v38 = vmul.f32 %v231_v18, %v222_v26 }
 0x4fc   :  { %v256_v33 = vmul.f32 %v1815_v56, %v250_v46 }
 0x4fd   :  { %v1803_v49 = vpop.permute.xlu1 %303  ;;  %v238_v45 = vmul.f32 %v1805_v50, %v232_v30  ;;  %v239_v37 = vmul.f32 %v1805_v50, %v233_v38 }
 0x4fe   :  { %v354_v50 = vpop.permute.xlu0 %353 }
 0x4ff   :  { %v240_v36 = vadd.f32 %v238_v45, %v215_v44  ;;  %v241_v0 = vadd.f32 %v239_v37, %v216_v48 }
 0x501   :  { %v1813_v55 = vpop.permute.xlu1 %260  ;;  %v258_v7 = vadd.f32 %v256_v33, %v240_v36  ;;  %v259_v10 = vadd.f32 %v257_v1, %v241_v0 }
 0x502   :  { %v265_v54 = vsel %vm264_vm13, %v1813_v55, %v263_v21  ;;  %v266_v59 = vsel %vm264_vm13, %v263_v21, %v1813_v55  ;;  %v336_v15 = vpop.permute.xlu0 %335  ;;  %v1098_v21 = vld [vmem:[#allocation5 + $0x10] ss:$0 sm:$0xff] }
 0x503   :  { %v275_v61 = vmul.f32 %v270_v47, %v265_v54  ;;  %v276_v2 = vmul.f32 %v274_v53, %v266_v59 }
 0x505   :  { %v1829_v3 = vpop.permute.xlu1 %328  ;;  %v281_v51 = vmul.f32 %v1831_v4, %v275_v61  ;;  %v282_v11 = vmul.f32 %v1831_v4, %v276_v2 }
 0x507   :  { %v283_v16 = vadd.f32 %v281_v51, %v258_v7  ;;  %v284_v18 = vadd.f32 %v282_v11, %v259_v10 }
 0x509   :  { %v288_v20 = vpop.permute.xlu1 %287 }
 0x50a   :  { %v290_v5 = vsel %vm289_vm14, %v286_v42, %v288_v20  ;;  %v291_v55 = vsel %vm289_vm14, %v288_v20, %v286_v42 }
 0x50b   :  { %v300_v8 = vmul.f32 %v295_v41, %v290_v5  ;;  %v301_v12 = vmul.f32 %v299_v62, %v291_v55 }
 0x50d   :  { %v311_v40 = vpop.permute.xlu1 %310  ;;  %v306_v17 = vmul.f32 %v1803_v49, %v300_v8  ;;  %v307_v19 = vmul.f32 %v1803_v49, %v301_v12 }
 0x50f   :  { %v308_v4 = vadd.f32 %v306_v17, %v283_v16  ;;  %v309_v26 = vadd.f32 %v307_v19, %v284_v18 }
 0x511   :  { %v313_v63 = vpop.permute.xlu1 %312 }
 0x512   :  { %v315_v13 = vsel %vm314_vm15, %v311_v40, %v313_v63  ;;  %v316_v14 = vsel %vm314_vm15, %v313_v63, %v311_v40 }
 0x513   :  { %v325_v57 = vmul.f32 %v320_v6, %v315_v13  ;;  %v326_v20 = vmul.f32 %v324_v9, %v316_v14 }
 0x515   :  { %v338_v56 = vpop.permute.xlu1 %337  ;;  %v331_v24 = vmul.f32 %v1829_v3, %v325_v57  ;;  %v332_v52 = vmul.f32 %v1829_v3, %v326_v20 }
 0x516   :  { %v340_v58 = vsel %vm339_vm0, %v336_v15, %v338_v56  ;;  %v341_v23 = vsel %vm339_vm0, %v338_v56, %v336_v15 }
 0x517   :  { %v350_v25 = vmul.f32 %v1098_v21, %v340_v58  ;;  %v351_v27 = vmul.f32 %v1099_v22, %v341_v23  ;;  %v333_v28 = vadd.f32 %v331_v24, %v308_v4  ;;  %v334_v30 = vadd.f32 %v332_v52, %v309_v26 }
 0x519   :  { %v356_v29 = vmul.f32 %v354_v50, %v350_v25  ;;  %v357_v31 = vmul.f32 %v354_v50, %v351_v27 }
 0x51b   :  { %v358_v32 = vadd.f32 %v356_v29, %v333_v28  ;;  %v359_v34 = vadd.f32 %v357_v31, %v334_v30 }
 0x51d   :  { %v362_v49 = vmul.f32 0.70710677, %v358_v32  ;;  %v363_v38 = vmul.f32 0.70710677, %v359_v34  ;;  %v360_v42 = vmul.f32 0.5, %v358_v32  ;;  %v361_v43 = vmul.f32 0.5, %v359_v34 }
 0x51f   :  { %1285 = verf.f32 %v362_v49 }
 0x520   :  { %1287 = verf.f32 %v363_v38 }
 0x529   :  { %v1286_v39 = vpop.eup %1285 }
 0x52a   :  { %v1288_v40 = vpop.eup %1287  ;;  %v366_v35 = vadd.f32 1.0, %v1286_v39 }
 0x52b   :  { %v367_v44 = vadd.f32 1.0, %v1288_v40 }
 0x52c   :  { %v368_v45 = vmul.f32 %v366_v35, %v360_v42 }
 0x52d   :  { %v369_v46 = vmul.f32 %v367_v44, %v361_v43 }
 0x56b   :  { %v1063_v3 = vpop.permute.xlu0 %1062 }
 0x56c   :  { %v1064_v47 = vrot.slane %v1063_v3, 4 }
 0x56e   :  { %v1066_v48 = vsel %vm813_vm6, %v368_v45, %v1064_v47  ;;  %v1067_v37 = vsel %vm813_vm6, %v369_v46, %v1064_v47 }
 0x56f   :  { %1072 = vst [vmem:[#allocation14] sm:$0xff] %v1066_v48  ;;  %1073 = vst [vmem:[#allocation14 + $0x8] sm:$0xff] %v1067_v37 }
 0x5b1   :  { %v1055_v53 = vpop.f32.mrb[8].mxu1 }
 0x5b2   :  { %v1068_v54 = vsel %vm813_vm6, %v1055_v53, %v368_v45  ;;  %v1070_v59 = vsel %vm813_vm6, %v1064_v47, %v1055_v53  ;;  %v1057_v41 = vpop.f32.mrb[9].mxu1 }
 0x5b3   :  { %1074 = vst [vmem:[#allocation14 + $0x10] sm:$0xff] %v1068_v54  ;;  %1076 = vst [vmem:[#allocation14 + $0x20] sm:$0xff] %v1070_v59  ;;  %v1069_v60 = vsel %vm813_vm6, %v1057_v41, %v369_v46  ;;  %v1071_v36 = vsel %vm813_vm6, %v1064_v47, %v1057_v41 }
 0x5b4   :  { %1075 = vst [vmem:[#allocation14 + $0x18] sm:$0xff] %v1069_v60  ;;  %1077 = vst [vmem:[#allocation14 + $0x28] sm:$0xff] %v1071_v36 }
 0x5b5   :  { %1454 = shalt.err (!%p1451_p4)
}
 0x5b6   :  { %s1455_s15 = scalar_lea.hbm %s1903_s11, 768 }
 0x5b7   :  { %p1456_p5 = scmp.ne.s32.totalorder %s1903_s11, %s1455_s15  ;;  %p1459_p6 = scmp.lt.u32.totalorder %s1455_s15, %s1903_s11 }
 0x5b9   :  { %p1461_p7 = pnand %p1459_p6, %p1456_p5 }
 0x5bb   :  { %1464 = shalt.err (!%p1461_p7)
}
 0x5bc   :  { %1089 = dma.vmem_to_hbm [thread:$0]  %s1084_s5, 768, %s1903_s11, [#allocation4], %s1476_s26, %s1476_s26, %s1477_s27  }
 0x5bd   :  { %1473 = dma.done.wait [#allocation4], 768  }
 0x5be   :  { %1474 = vsyncadd [#allocation4], 4294966528 }
 0x5bf   :  { %1093 = vsyncpa [#allocation3], 1 }
 0x5c0   :  { %1094 = vsyncpa [#allocation6], 1 }
 0x5c1   :  { %1095 = vsyncpa [#allocation9], 1 }
 0x5c2   :  { %1096 = vsyncpa [#allocation12], 1 }
 0x5c3   :  { %1097 = vsyncpa [#allocation4], 1 }

</bundles_post_ra>
